<compile_context>
chip_gen: v7x
topology: tpu7x:2x2x1
jax: 0.10.0
libtpu: 0.0.40
codegen_flags: <defaults>
</compile_context>

<pallas_src>
import jax
import jax.numpy as jnp
from jax.experimental import pallas as pl
from jax.experimental.pallas import tpu as pltpu


C_OUT_TILE = 384  # 1152 = 3 * 384; multiple of 128 -> lane-dense output tiles


def se_conv_bn_conv_kernel(gate_ref, x_ref, w1_ref, gamma_ref, beta_ref,
                           w2_ref, out_ref):
    # gate_ref  [1, C_in]        f32
    # x_ref     [HW, C_in]       bf16
    # w1_ref    [C_in, C_mid]    bf16
    # gamma/beta [1, C_mid]      f32
    # w2_ref    [C_mid, C_OUT_TILE] bf16   (per grid step)
    # out_ref   [HW, C_OUT_TILE] f32       (per grid step)

    # --- SE excite: sigmoid gate + lane-broadcast multiply (f32 path) ---
    gate = jax.nn.sigmoid(gate_ref[...])                       # [1, C_in]
    xg = x_ref[...].astype(jnp.float32) * gate                 # [HW, C_in]

    # --- 1x1 conv #1 (C_in -> C_mid): MXU matmul, bf16 operands, f32 acc ---
    y = jnp.dot(xg.astype(jnp.bfloat16), w1_ref[...],
                preferred_element_type=jnp.float32)            # [HW, C_mid]

    # --- BatchNorm2d, training-mode batch stats over the HW=49 logical rows,
    #     folded into a single per-element FMA (all in f32) ---
    mean = jnp.mean(y, axis=0, keepdims=True)                  # [1, C_mid]
    centered = y - mean
    var = jnp.mean(centered * centered, axis=0, keepdims=True)  # biased var
    scale = gamma_ref[...] * jax.lax.rsqrt(var + 1e-5)         # [1, C_mid]
    bias = beta_ref[...] - mean * scale                        # [1, C_mid]
    y_bn = (y * scale + bias).astype(jnp.bfloat16)             # [HW, C_mid]

    # --- 1x1 conv #2 tile (C_mid -> C_OUT_TILE): MXU matmul ---
    z = jnp.dot(y_bn, w2_ref[...], preferred_element_type=jnp.float32)
    out_ref[...] = z.astype(out_ref.dtype)


def se_conv_bn_conv(x176, x172, w1, gamma, beta, w2):
    """x176: [N,672,1,1], x172: [N,672,7,7] (N must be 1), w1: [192,672],
    w2: [1152,192], gamma/beta: [192]. Returns [N,1152,7,7] float32."""
    N, C_in, H, W = x172.shape
    assert N == 1, "kernel specialised to batch 1 (as in the reference module)"
    C_mid = w1.shape[0]
    C_out = w2.shape[0]
    HW = H * W
    assert C_out % C_OUT_TILE == 0

    # Layout plumbing (channels on lanes) done in the wrapper, not in-kernel.
    gate2d = x176.reshape(1, C_in).astype(jnp.float32)             # [1, 672]
    x2d = x172.reshape(C_in, HW).T.astype(jnp.bfloat16)            # [49, 672]
    w1_t = w1.reshape(C_mid, C_in).T.astype(jnp.bfloat16)          # [672, 192]
    w2_t = w2.reshape(C_out, C_mid).T.astype(jnp.bfloat16)         # [192, 1152]
    gamma2d = gamma.reshape(1, C_mid).astype(jnp.float32)          # [1, 192]
    beta2d = beta.reshape(1, C_mid).astype(jnp.float32)            # [1, 192]

    grid = (C_out // C_OUT_TILE,)

    out2d = pl.pallas_call(
        se_conv_bn_conv_kernel,
        out_shape=jax.ShapeDtypeStruct((HW, C_out), jnp.float32),
        grid=grid,
        in_specs=[
            pl.BlockSpec((1, C_in), lambda j: (0, 0)),             # gate
            pl.BlockSpec((HW, C_in), lambda j: (0, 0)),            # x
            pl.BlockSpec((C_in, C_mid), lambda j: (0, 0)),         # w1
            pl.BlockSpec((1, C_mid), lambda j: (0, 0)),            # gamma
            pl.BlockSpec((1, C_mid), lambda j: (0, 0)),            # beta
            pl.BlockSpec((C_mid, C_OUT_TILE), lambda j: (0, j)),   # w2 tile
        ],
        out_specs=pl.BlockSpec((HW, C_OUT_TILE), lambda j: (0, j)),
        compiler_params=pltpu.CompilerParams(
            dimension_semantics=("parallel",)),
    )(gate2d, x2d, w1_t, gamma2d, beta2d, w2_t)

    # [HW, C_out] -> NCHW [1, C_out, H, W]
    return out2d.T.reshape(N, C_out, H, W)


def reference(x176, x172, w1, gamma, beta, w2):
    """Pure-JAX f32 reference matching the PyTorch forward."""
    N, C_in, H, W = x172.shape
    C_mid, C_out = w1.shape[0], w2.shape[0]
    g = jax.nn.sigmoid(x176)
    x = (g * x172).reshape(C_in, H * W)                  # [672, 49]
    y = w1 @ x                                           # [192, 49]
    mean = jnp.mean(y, axis=1, keepdims=True)
    var = jnp.mean((y - mean) ** 2, axis=1, keepdims=True)
    y_bn = (y - mean) * jax.lax.rsqrt(var + 1e-5) * gamma[:, None] + beta[:, None]
    z = w2 @ y_bn                                        # [1152, 49]
    return z.reshape(N, C_out, H, W)


if __name__ == "__main__":
    key = jax.random.PRNGKey(0)
    k1, k2, k3, k4 = jax.random.split(key, 4)

    # Inputs (shapes implied by the PyTorch module's forward).
    x172 = jax.random.normal(k1, (1, 672, 7, 7), dtype=jnp.float32)
    x176 = jax.random.normal(k2, (1, 672, 1, 1), dtype=jnp.float32)

    # Deterministic parameter init (synthetic, not a checkpoint).
    w1 = jax.random.normal(k3, (192, 672), dtype=jnp.float32) * 0.02   # conv2d59
    w2 = jax.random.normal(k4, (1152, 192), dtype=jnp.float32) * 0.02  # conv2d60
    gamma = jnp.ones((192,), dtype=jnp.float32)                        # bn weight
    beta = jnp.zeros((192,), dtype=jnp.float32)                        # bn bias

    out = se_conv_bn_conv(x176, x172, w1, gamma, beta, w2)
    out = jax.block_until_ready(out)
    assert out.shape == (1, 1152, 7, 7)

    # Sanity check against the f32 reference (loose tol: bf16 MXU operands).
    ref = jax.block_until_ready(reference(x176, x172, w1, gamma, beta, w2))
    max_err = float(jnp.max(jnp.abs(out - ref)))
    assert max_err < 8e-2, f"max abs err too large: {max_err}"

    print("KERNEL_OK")
</pallas_src>

<mosaic_0001>
module attributes {stable_mosaic.version = 11 : i64} {
  func.func @se_conv_bn_conv_kernel(%arg0: i32, %arg1: memref<1x672xf32, #tpu.memory_space<vmem>>, %arg2: memref<49x672xbf16, #tpu.memory_space<vmem>>, %arg3: memref<672x192xbf16, #tpu.memory_space<vmem>>, %arg4: memref<1x192xf32, #tpu.memory_space<vmem>>, %arg5: memref<1x192xf32, #tpu.memory_space<vmem>>, %arg6: memref<192x384xbf16, #tpu.memory_space<vmem>>, %arg7: memref<49x384xf32, #tpu.memory_space<vmem>>) attributes {dimension_semantics = [#tpu.dimension_semantics<parallel>], iteration_bounds = array<i64: 3>, scalar_prefetch = 0 : i64, scratch_operands = 0 : i64, tpu.core_type = #tpu.core_type<tc>, window_params = [{pipeline_mode = #tpu.pipeline_mode<synchronous>, transform_indices = @transform_0, window_bounds = array<i64: 1, 672>}, {pipeline_mode = #tpu.pipeline_mode<synchronous>, transform_indices = @transform_1, window_bounds = array<i64: 49, 672>}, {pipeline_mode = #tpu.pipeline_mode<synchronous>, transform_indices = @transform_2, window_bounds = array<i64: 672, 192>}, {pipeline_mode = #tpu.pipeline_mode<synchronous>, transform_indices = @transform_3, window_bounds = array<i64: 1, 192>}, {pipeline_mode = #tpu.pipeline_mode<synchronous>, transform_indices = @transform_4, window_bounds = array<i64: 1, 192>}, {transform_indices = @transform_5, window_bounds = array<i64: 192, 384>}, {transform_indices = @transform_6, window_bounds = array<i64: 49, 384>}]} {
    %c0 = arith.constant 0 : index
    %c0_0 = arith.constant 0 : index
    %0 = vector.load %arg1[%c0, %c0_0] : memref<1x672xf32, #tpu.memory_space<vmem>>, vector<1x672xf32>
    %1 = arith.negf %0 : vector<1x672xf32>
    %2 = math.exp %1 : vector<1x672xf32>
    %cst = arith.constant 1.000000e+00 : f32
    %3 = vector.broadcast %cst : f32 to vector<1x672xf32>
    %4 = arith.addf %3, %2 : vector<1x672xf32>
    %5 = arith.divf %3, %4 : vector<1x672xf32>
    %c0_1 = arith.constant 0 : index
    %c0_2 = arith.constant 0 : index
    %6 = vector.load %arg2[%c0_1, %c0_2] : memref<49x672xbf16, #tpu.memory_space<vmem>>, vector<49x672xbf16>
    %7 = arith.extf %6 : vector<49x672xbf16> to vector<49x672xf32>
    %8 = vector.broadcast %5 : vector<1x672xf32> to vector<49x672xf32>
    %9 = arith.mulf %7, %8 : vector<49x672xf32>
    %10 = arith.truncf %9 : vector<49x672xf32> to vector<49x672xbf16>
    %c0_3 = arith.constant 0 : index
    %c0_4 = arith.constant 0 : index
    %11 = vector.load %arg3[%c0_3, %c0_4] : memref<672x192xbf16, #tpu.memory_space<vmem>>, vector<672x192xbf16>
    %cst_5 = arith.constant dense<0.000000e+00> : vector<49x192xf32>
    %12 = tpu.matmul %10, %11, %cst_5 {dimension_numbers = #tpu.dot_dimension_numbers<[1], [0], [0], [1], [0, 0, 1, 1], [], []>} : vector<49x672xbf16>, vector<672x192xbf16>, vector<49x192xf32> -> vector<49x192xf32>
    %cst_6 = arith.constant dense<0.000000e+00> : vector<192xf32>
    %13 = vector.multi_reduction <add>, %12, %cst_6 [0] : vector<49x192xf32> to vector<192xf32>
    %14 = vector.shape_cast %13 : vector<192xf32> to vector<1x192xf32>
    %cst_7 = arith.constant 4.900000e+01 : f32
    %15 = vector.broadcast %cst_7 : f32 to vector<1x192xf32>
    %16 = arith.divf %14, %15 : vector<1x192xf32>
    %17 = vector.broadcast %16 : vector<1x192xf32> to vector<49x192xf32>
    %18 = arith.subf %12, %17 : vector<49x192xf32>
    %19 = arith.mulf %18, %18 : vector<49x192xf32>
    %cst_8 = arith.constant dense<0.000000e+00> : vector<192xf32>
    %20 = vector.multi_reduction <add>, %19, %cst_8 [0] : vector<49x192xf32> to vector<192xf32>
    %21 = vector.shape_cast %20 : vector<192xf32> to vector<1x192xf32>
    %cst_9 = arith.constant 4.900000e+01 : f32
    %22 = vector.broadcast %cst_9 : f32 to vector<1x192xf32>
    %23 = arith.divf %21, %22 : vector<1x192xf32>
    %c0_10 = arith.constant 0 : index
    %c0_11 = arith.constant 0 : index
    %24 = vector.load %arg4[%c0_10, %c0_11] : memref<1x192xf32, #tpu.memory_space<vmem>>, vector<1x192xf32>
    %cst_12 = arith.constant 9.99999974E-6 : f32
    %25 = vector.broadcast %cst_12 : f32 to vector<1x192xf32>
    %26 = arith.addf %23, %25 : vector<1x192xf32>
    %27 = math.rsqrt %26 : vector<1x192xf32>
    %28 = arith.mulf %24, %27 : vector<1x192xf32>
    %c0_13 = arith.constant 0 : index
    %c0_14 = arith.constant 0 : index
    %29 = vector.load %arg5[%c0_13, %c0_14] : memref<1x192xf32, #tpu.memory_space<vmem>>, vector<1x192xf32>
    %30 = arith.mulf %16, %28 : vector<1x192xf32>
    %31 = arith.subf %29, %30 : vector<1x192xf32>
    %32 = vector.broadcast %28 : vector<1x192xf32> to vector<49x192xf32>
    %33 = arith.mulf %12, %32 : vector<49x192xf32>
    %34 = vector.broadcast %31 : vector<1x192xf32> to vector<49x192xf32>
    %35 = arith.addf %33, %34 : vector<49x192xf32>
    %36 = arith.truncf %35 : vector<49x192xf32> to vector<49x192xbf16>
    %c0_15 = arith.constant 0 : index
    %c0_16 = arith.constant 0 : index
    %37 = vector.load %arg6[%c0_15, %c0_16] : memref<192x384xbf16, #tpu.memory_space<vmem>>, vector<192x384xbf16>
    %cst_17 = arith.constant dense<0.000000e+00> : vector<49x384xf32>
    %38 = tpu.matmul %36, %37, %cst_17 {dimension_numbers = #tpu.dot_dimension_numbers<[1], [0], [0], [1], [0, 0, 1, 1], [], []>} : vector<49x192xbf16>, vector<192x384xbf16>, vector<49x384xf32> -> vector<49x384xf32>
    %c0_18 = arith.constant 0 : index
    %c0_19 = arith.constant 0 : index
    %39 = vector.load %arg7[%c0_18, %c0_19] : memref<49x384xf32, #tpu.memory_space<vmem>>, vector<49x384xf32>
    tpu.vector_store %arg7[%c0_18, %c0_19], %38 {strides = array<i32>} : memref<49x384xf32, #tpu.memory_space<vmem>>, vector<49x384xf32>,
    return
  }
  func.func @transform_0(%arg0: i32) -> (i32, i32) {
    %c0_i32 = arith.constant 0 : i32
    %c0_i32_0 = arith.constant 0 : i32
    %c0_i32_1 = arith.constant 0 : i32
    return %c0_i32, %c0_i32_0 : i32, i32
  }
  func.func @transform_1(%arg0: i32) -> (i32, i32) {
    %c0_i32 = arith.constant 0 : i32
    %c0_i32_0 = arith.constant 0 : i32
    %c0_i32_1 = arith.constant 0 : i32
    return %c0_i32, %c0_i32_0 : i32, i32
  }
  func.func @transform_2(%arg0: i32) -> (i32, i32) {
    %c0_i32 = arith.constant 0 : i32
    %c0_i32_0 = arith.constant 0 : i32
    %c0_i32_1 = arith.constant 0 : i32
    return %c0_i32, %c0_i32_0 : i32, i32
  }
  func.func @transform_3(%arg0: i32) -> (i32, i32) {
    %c0_i32 = arith.constant 0 : i32
    %c0_i32_0 = arith.constant 0 : i32
    %c0_i32_1 = arith.constant 0 : i32
    return %c0_i32, %c0_i32_0 : i32, i32
  }
  func.func @transform_4(%arg0: i32) -> (i32, i32) {
    %c0_i32 = arith.constant 0 : i32
    %c0_i32_0 = arith.constant 0 : i32
    %c0_i32_1 = arith.constant 0 : i32
    return %c0_i32, %c0_i32_0 : i32, i32
  }
  func.func @transform_5(%arg0: i32) -> (i32, i32) {
    %c0_i32 = arith.constant 0 : i32
    %c0_i32_0 = arith.constant 0 : i32
    return %c0_i32, %arg0 : i32, i32
  }
  func.func @transform_6(%arg0: i32) -> (i32, i32) {
    %c0_i32 = arith.constant 0 : i32
    %c0_i32_0 = arith.constant 0 : i32
    return %c0_i32, %arg0 : i32, i32
  }
}

</mosaic_0001>

<bundles_post_ra>
// kernel: tpu_custom_call.1
= control target key start
LH: loop header
LB: loop body
LE: loop exit
PB: predicated region body
PF: predicated region fallthrough
CT: control target
= control target key end

     0   :  { %11 = vsyncpa [#allocation4], 0  ;;  %s3402_s0 = inlined_call_operand.vmem [shape: f32[1,672], index: 0, kind: input, shape index: {}]   ;;  %s3403_s1 = inlined_call_operand.vmem [shape: bf16[49,672], index: 1, kind: input, shape index: {}]   ;;  %s3404_s2 = inlined_call_operand.vmem [shape: bf16[672,192], index: 2, kind: input, shape index: {}]   ;;  %s3405_s3 = inlined_call_operand.vmem [shape: f32[1,192], index: 3, kind: input, shape index: {}]   ;;  %s3406_s4 = inlined_call_operand.vmem [shape: f32[1,192], index: 4, kind: input, shape index: {}]   ;;  %s3407_s5 = inlined_call_operand.vmem [shape: bf16[192,1152], index: 5, kind: input, shape index: {}]   ;;  %s3408_s6 = inlined_call_operand.hbm [shape: f32[49,1152], index: 6, kind: output, shape index: {}]  }
   0x1   :  { %13 = vsyncpa [#allocation4 + $0x1], 0  ;;  %s2526_s21 = smov 0   ;;  %s2528_s22 = smov 0  }
   0x2   :  { %s2530_s23 = smov 0   ;;  %s2532_s24 = smov 0  }
   0x3 LB: > { %s1970_s25 = sadd.s32 4294967295, %s2483_s24   ;;  %s1971_s26 = sadd.s32 4294967294, %s2483_s24   ;;  %s2483_s24 = sphi %s2532_s24, %s3414_s24   ;;  %s2479_s23 = sphi %s2530_s23, %s3413_s23   ;;  %s2475_s22 = sphi %s2528_s22, %s3412_s22   ;;  %s2471_s21 = sphi %s2526_s21, %s3411_s21  }
   0x4   : > { %s2549_s27 = sadd.s32 1, %s2483_s24   ;;  %s131_s28 = sadd.s32 1, %s2479_s23 }
   0x5   : > { %s128_s29 = ssub.s32 %s2483_s24, %s2549_s27  ;;  %p138_p0 = scmp.ne.s32.totalorder %s2479_s23, %s2475_s22 }
   0x6   : > { %p129_p1 = scmp.eq.s32.totalorder %s128_s29, 0  ;;  %p139_p2 = scmp.eq.s32.totalorder %s2483_s24, 0 }
   0x7   : > { %p168_p3 = scmp.eq.s32.totalorder %s1970_s25, 2  ;;  %p173_p4 = scmp.ne.s32.totalorder %s2475_s22, %s2471_s21 }
   0x8   : > { %s2562_s30 = scalar_select %p129_p1, %s2479_s23, %s131_s28  }
   0x9   : > { %p140_p5 = por %p139_p2, %p138_p0  ;;  %p2564_p6 = por %p168_p3, %p138_p0 }
   0xa   : > { %p174_p7 = scmp.eq.s32.totalorder %s1971_s26, 2  ;;  %p1973_p9 = scmp.ge.s32.totalorder %s2483_s24, 3 }
   0xc   : > { %p2568_p8 = por %p174_p7, %p173_p4  ;;  %205 = sbr.rel (%p1973_p9) target bundleno = 52 (0x34), region = 36 }
  0x13   : > { %208 = sbr.rel (!%p140_p5) target bundleno = 52 (0x34), region = 40  ;;  %s210_s9 = sand.u32 (%p140_p5), 1, %s2479_s23  }
  0x14   : > { %s2160_s10 = smul.u32 (%p140_p5), 12, %s2483_s24 }
  0x15   : > { %s2192_s11 = smul.u32 (%p140_p5), 288, %s210_s9 }
  0x16   : > { %s2578_s14 = scalar_lea.vmem (%p140_p5), %s3407_s5, %s2160_s10 }
  0x17   : > { %v230_v0 = vld [vmem:[%s2578_s14] sm:$0xff] (%p140_p5)  ;;  %v234_v2 = vld [vmem:[%s2578_s14 + $0x48] sm:$0xff] (%p140_p5)  ;;  %s2583_s15 = scalar_lea.vmem (%p140_p5), [#allocation2], %s2192_s11  ;;  %v238_v4 = vld [vmem:[%s2578_s14 + $0x90] sm:$0xff] (%p140_p5) }
  0x18   : > { %v232_v1 = vld [vmem:[%s2578_s14 + $0x24] sm:$0xff] (%p140_p5)  ;;  %231 = vst [vmem:[%s2583_s15] sm:$0xff] (%p140_p5), %v230_v0  ;;  %235 = vst [vmem:[%s2583_s15 + $0x18] sm:$0xff] (%p140_p5), %v234_v2  ;;  %v236_v3 = vld [vmem:[%s2578_s14 + $0x6c] sm:$0xff] (%p140_p5) }
  0x19   : > { %233 = vst [vmem:[%s2583_s15 + $0xc] sm:$0xff] (%p140_p5), %v232_v1  ;;  %v240_v5 = vld [vmem:[%s2578_s14 + $0xb4] sm:$0xff] (%p140_p5)  ;;  %237 = vst [vmem:[%s2583_s15 + $0x24] sm:$0xff] (%p140_p5), %v236_v3  ;;  %v244_v7 = vld [vmem:[%s2578_s14 + $0xfc] sm:$0xff] (%p140_p5) }
  0x1a   : > { %239 = vst [vmem:[%s2583_s15 + $0x30] sm:$0xff] %v238_v4  ;;  %241 = vst [vmem:[%s2583_s15 + $0x3c] sm:$0xff] %v240_v5  ;;  %v242_v6 = vld [vmem:[%s2578_s14 + $0xd8] sm:$0xff]  ;;  %v246_v8 = vld [vmem:[%s2578_s14 + $0x120] sm:$0xff] }
  0x1b   : > { %243 = vst [vmem:[%s2583_s15 + $0x48] sm:$0xff] %v242_v6  ;;  %245 = vst [vmem:[%s2583_s15 + $0x54] sm:$0xff] %v244_v7  ;;  %v248_v9 = vld [vmem:[%s2578_s14 + $0x144] sm:$0xff]  ;;  %v252_v11 = vld [vmem:[%s2578_s14 + $0x18c] sm:$0xff] }
  0x1c   : > { %247 = vst [vmem:[%s2583_s15 + $0x60] sm:$0xff] %v246_v8  ;;  %v250_v10 = vld [vmem:[%s2578_s14 + $0x168] sm:$0xff]  ;;  %249 = vst [vmem:[%s2583_s15 + $0x6c] sm:$0xff] %v248_v9  ;;  %v254_v12 = vld [vmem:[%s2578_s14 + $0x1b0] sm:$0xff] }
  0x1d   : > { %251 = vst [vmem:[%s2583_s15 + $0x78] sm:$0xff] %v250_v10  ;;  %253 = vst [vmem:[%s2583_s15 + $0x84] sm:$0xff] %v252_v11  ;;  %v256_v13 = vld [vmem:[%s2578_s14 + $0x1d4] sm:$0xff]  ;;  %v260_v15 = vld [vmem:[%s2578_s14 + $0x21c] sm:$0xff] }
  0x1e   : > { %v258_v14 = vld [vmem:[%s2578_s14 + $0x1f8] sm:$0xff]  ;;  %255 = vst [vmem:[%s2583_s15 + $0x90] sm:$0xff] %v254_v12  ;;  %257 = vst [vmem:[%s2583_s15 + $0x9c] sm:$0xff] %v256_v13  ;;  %v262_v16 = vld [vmem:[%s2578_s14 + $0x240] sm:$0xff] }
  0x1f   : > { %259 = vst [vmem:[%s2583_s15 + $0xa8] sm:$0xff] %v258_v14  ;;  %v264_v17 = vld [vmem:[%s2578_s14 + $0x264] sm:$0xff]  ;;  %261 = vst [vmem:[%s2583_s15 + $0xb4] sm:$0xff] %v260_v15  ;;  %v268_v19 = vld [vmem:[%s2578_s14 + $0x2ac] sm:$0xff] }
  0x20   : > { %263 = vst [vmem:[%s2583_s15 + $0xc0] sm:$0xff] %v262_v16  ;;  %265 = vst [vmem:[%s2583_s15 + $0xcc] sm:$0xff] %v264_v17  ;;  %v266_v18 = vld [vmem:[%s2578_s14 + $0x288] sm:$0xff]  ;;  %v270_v20 = vld [vmem:[%s2578_s14 + $0x2d0] sm:$0xff] }
  0x21   : > { %267 = vst [vmem:[%s2583_s15 + $0xd8] sm:$0xff] %v266_v18  ;;  %269 = vst [vmem:[%s2583_s15 + $0xe4] sm:$0xff] %v268_v19  ;;  %v272_v21 = vld [vmem:[%s2578_s14 + $0x2f4] sm:$0xff]  ;;  %v276_v23 = vld [vmem:[%s2578_s14 + $0x33c] sm:$0xff] }
  0x22   : > { %271 = vst [vmem:[%s2583_s15 + $0xf0] sm:$0xff] %v270_v20  ;;  %v274_v22 = vld [vmem:[%s2578_s14 + $0x318] sm:$0xff]  ;;  %273 = vst [vmem:[%s2583_s15 + $0xfc] sm:$0xff] %v272_v21  ;;  %v1975_v24 = vld [vmem:[%s2578_s14 + $0x8] sm:$0xf] }
  0x23   : > { %275 = vst [vmem:[%s2583_s15 + $0x108] sm:$0xff] %v274_v22  ;;  %277 = vst [vmem:[%s2583_s15 + $0x114] sm:$0xff] %v276_v23  ;;  %v1977_v25 = vld [vmem:[%s2578_s14 + $0x2c] sm:$0xf]  ;;  %v1979_v26 = vld [vmem:[%s2578_s14 + $0x50] sm:$0xf] }
  0x24   : > { %1976 = vst [vmem:[%s2583_s15 + $0x8] sm:$0xf] %v1975_v24  ;;  %1978 = vst [vmem:[%s2583_s15 + $0x14] sm:$0xf] %v1977_v25  ;;  %v1981_v27 = vld [vmem:[%s2578_s14 + $0x74] sm:$0xf] }
  0x25   : > { %1980 = vst [vmem:[%s2583_s15 + $0x20] sm:$0xf] %v1979_v26  ;;  %v1983_v28 = vld [vmem:[%s2578_s14 + $0x98] sm:$0xf]  ;;  %v1985_v29 = vld [vmem:[%s2578_s14 + $0xbc] sm:$0xf] }
  0x26   : > { %1982 = vst [vmem:[%s2583_s15 + $0x2c] sm:$0xf] %v1981_v27  ;;  %1984 = vst [vmem:[%s2583_s15 + $0x38] sm:$0xf] %v1983_v28  ;;  %v1987_v30 = vld [vmem:[%s2578_s14 + $0xe0] sm:$0xf] }
  0x27   : > { %1986 = vst [vmem:[%s2583_s15 + $0x44] sm:$0xf] %v1985_v29  ;;  %v1989_v31 = vld [vmem:[%s2578_s14 + $0x104] sm:$0xf]  ;;  %v1991_v32 = vld [vmem:[%s2578_s14 + $0x128] sm:$0xf] }
  0x28   : > { %1988 = vst [vmem:[%s2583_s15 + $0x50] sm:$0xf] %v1987_v30  ;;  %1990 = vst [vmem:[%s2583_s15 + $0x5c] sm:$0xf] %v1989_v31  ;;  %v1993_v33 = vld [vmem:[%s2578_s14 + $0x14c] sm:$0xf] }
  0x29   : > { %1992 = vst [vmem:[%s2583_s15 + $0x68] sm:$0xf] %v1991_v32  ;;  %v1995_v34 = vld [vmem:[%s2578_s14 + $0x170] sm:$0xf]  ;;  %v1997_v35 = vld [vmem:[%s2578_s14 + $0x194] sm:$0xf] }
  0x2a   : > { %1994 = vst [vmem:[%s2583_s15 + $0x74] sm:$0xf] %v1993_v33  ;;  %1996 = vst [vmem:[%s2583_s15 + $0x80] sm:$0xf] %v1995_v34  ;;  %v1999_v36 = vld [vmem:[%s2578_s14 + $0x1b8] sm:$0xf] }
  0x2b   : > { %1998 = vst [vmem:[%s2583_s15 + $0x8c] sm:$0xf] %v1997_v35  ;;  %v2001_v37 = vld [vmem:[%s2578_s14 + $0x1dc] sm:$0xf]  ;;  %v2003_v38 = vld [vmem:[%s2578_s14 + $0x200] sm:$0xf] }
  0x2c   : > { %2000 = vst [vmem:[%s2583_s15 + $0x98] sm:$0xf] %v1999_v36  ;;  %2002 = vst [vmem:[%s2583_s15 + $0xa4] sm:$0xf] %v2001_v37  ;;  %v2005_v39 = vld [vmem:[%s2578_s14 + $0x224] sm:$0xf] }
  0x2d   : > { %2004 = vst [vmem:[%s2583_s15 + $0xb0] sm:$0xf] %v2003_v38  ;;  %v2007_v40 = vld [vmem:[%s2578_s14 + $0x248] sm:$0xf]  ;;  %v2009_v41 = vld [vmem:[%s2578_s14 + $0x26c] sm:$0xf] }
  0x2e   : > { %2006 = vst [vmem:[%s2583_s15 + $0xbc] sm:$0xf] %v2005_v39  ;;  %2008 = vst [vmem:[%s2583_s15 + $0xc8] sm:$0xf] %v2007_v40  ;;  %v2011_v42 = vld [vmem:[%s2578_s14 + $0x290] sm:$0xf] }
  0x2f   : > { %2010 = vst [vmem:[%s2583_s15 + $0xd4] sm:$0xf] %v2009_v41  ;;  %v2013_v43 = vld [vmem:[%s2578_s14 + $0x2b4] sm:$0xf]  ;;  %v2015_v44 = vld [vmem:[%s2578_s14 + $0x2d8] sm:$0xf] }
  0x30   : > { %2012 = vst [vmem:[%s2583_s15 + $0xe0] sm:$0xf] %v2011_v42  ;;  %2014 = vst [vmem:[%s2583_s15 + $0xec] sm:$0xf] %v2013_v43  ;;  %v2017_v45 = vld [vmem:[%s2578_s14 + $0x2fc] sm:$0xf] }
  0x31   : > { %2016 = vst [vmem:[%s2583_s15 + $0xf8] sm:$0xf] %v2015_v44  ;;  %v2019_v46 = vld [vmem:[%s2578_s14 + $0x320] sm:$0xf]  ;;  %v2021_v47 = vld [vmem:[%s2578_s14 + $0x344] sm:$0xf] }
  0x32   : > { %2018 = vst [vmem:[%s2583_s15 + $0x104] sm:$0xf] %v2017_v45  ;;  %2020 = vst [vmem:[%s2583_s15 + $0x110] sm:$0xf] %v2019_v46 }
  0x33   : > { %2022 = vst [vmem:[%s2583_s15 + $0x11c] sm:$0xf] %v2021_v47 }
  0x34 PF: > { %p2023_p10 = scmp.ge.s32.totalorder %s2483_s24, 1  ;;  %p337_p11 = scmp.lt.s32.totalorder %s2483_s24, 4 }
  0x36   : > { %p338_p12 = pnand %p2023_p10, %p337_p11 }
  0x37   : > { %v2239_v48 = vld [vmem:[%s3404_s2 + $0x4] ss:$8 sps:$4 sm:$0xff] (!%p338_p12)   ;;  %v2241_v49 = vld [vmem:[%s3404_s2] ss:$8 sps:$4 sm:$0xff] (!%p338_p12)   ;;  %v2242_v50 = vld [vmem:[%s3404_s2 + $0x14] ss:$8 sps:$4 sm:$0xff] (!%p338_p12)   ;;  %v447_v13 = vlaneseq (!%p338_p12) }
  0x38   : > { %341 = sbr.rel (%p338_p12) target bundleno = 813 (0x32d), region = 66  ;;  %1060 = vmatprep.subr.bf16.mxu0 (!%p338_p12), %v2239_v48  ;;  %v2244_v51 = vld [vmem:[%s3404_s2 + $0x10] ss:$8 sps:$4 sm:$0xff] (!%p338_p12)   ;;  %v2245_v52 = vld [vmem:[%s3404_s2 + $0x24] ss:$8 sps:$4 sm:$0xff] (!%p338_p12)   ;;  %vm1047_vm0 = vcmask (!%p338_p12), 261120  }
  0x39   : > { %1061 = vmatpush1.bf16.msra.mxu0 (!%p338_p12), %v2241_v49  ;;  %v2247_v53 = vld [vmem:[%s3404_s2 + $0x20] ss:$8 sps:$4 sm:$0xff] (!%p338_p12)   ;;  %v2248_v54 = vld [vmem:[%s3404_s2 + $0x34] ss:$8 sps:$4 sm:$0xff] (!%p338_p12)   ;;  %v2250_v55 = vld [vmem:[%s3404_s2 + $0x30] ss:$8 sps:$4 sm:$0xff] (!%p338_p12)  }
  0x3a   : > { %1062 = vmatprep.subr.bf16.mxu0 (!%p338_p12), %v2242_v50  ;;  %v2251_v56 = vld [vmem:[%s3404_s2 + $0x44] ss:$8 sps:$4 sm:$0xff] (!%p338_p12)   ;;  %v2253_v57 = vld [vmem:[%s3404_s2 + $0x40] ss:$8 sps:$4 sm:$0xff] (!%p338_p12)   ;;  %v2254_v58 = vld [vmem:[%s3404_s2 + $0x54] ss:$8 sps:$4 sm:$0xff] (!%p338_p12)  }
  0x3b   : > { %v2256_v59 = vld [vmem:[%s3404_s2 + $0x50] ss:$8 sps:$4 sm:$0xff] (!%p338_p12)   ;;  %v2257_v60 = vld [vmem:[%s3404_s2 + $0x64] ss:$8 sps:$4 sm:$0xff] (!%p338_p12)   ;;  %v2259_v63 = vld [vmem:[%s3404_s2 + $0x60] ss:$8 sps:$4 sm:$0xff] (!%p338_p12)  }
  0x3c   : > { %v376_v61 = vld [vmem:[%s3402_s0] sm:$0x3f] (!%p338_p12)  ;;  %v2260_v0 = vld [vmem:[%s3404_s2 + $0x74] ss:$8 sps:$4 sm:$0xff] (!%p338_p12)   ;;  %v2262_v1 = vld [vmem:[%s3404_s2 + $0x70] ss:$8 sps:$4 sm:$0xff] (!%p338_p12)  }
  0x3d   : > { %1063 = vmatpush1.bf16.msra.mxu0 (!%p338_p12), %v2244_v51  ;;  %v2024_v62 = vmul.f32 (!%p338_p12), -1.442695, %v376_v61  ;;  %v2263_v2 = vld [vmem:[%s3404_s2 + $0x84] ss:$8 sps:$4 sm:$0xff] (!%p338_p12)   ;;  %v2265_v3 = vld [vmem:[%s3404_s2 + $0x80] ss:$8 sps:$4 sm:$0xff] (!%p338_p12)  }
  0x3e   : > { %1064 = vmatprep.subr.bf16.mxu0 (!%p338_p12), %v2245_v52  ;;  %v2305_v4 = vld [vmem:[%s3404_s2 + $0x204] ss:$8 sps:$4 sm:$0xff] (!%p338_p12)   ;;  %v2307_v5 = vld [vmem:[%s3404_s2 + $0x200] ss:$8 sps:$4 sm:$0xff] (!%p338_p12)   ;;  %v2266_v6 = vld [vmem:[%s3404_s2 + $0x94] ss:$8 sps:$4 sm:$0xff] (!%p338_p12)  }
  0x3f   : > { %2413 = vpow2.f32 %v2024_v62  ;;  %1202 = vmatprep.subr.bf16.mxu1 %v2305_v4  ;;  %v2311_v7 = vld [vmem:[%s3404_s2 + $0x214] ss:$8 sps:$4 sm:$0xff]   ;;  %v2313_v9 = vld [vmem:[%s3404_s2 + $0x210] ss:$8 sps:$4 sm:$0xff]   ;;  %v2269_v12 = vld [vmem:[%s3404_s2 + $0xa4] ss:$8 sps:$4 sm:$0xff]  }
  0x40   : > { %1203 = vmatpush1.bf16.msra.mxu1 %v2307_v5  ;;  %v2268_v10 = vld [vmem:[%s3404_s2 + $0x90] ss:$8 sps:$4 sm:$0xff]   ;;  %v2317_v14 = vld [vmem:[%s3404_s2 + $0x224] ss:$8 sps:$4 sm:$0xff]   ;;  %v2319_v15 = vld [vmem:[%s3404_s2 + $0x220] ss:$8 sps:$4 sm:$0xff]  }
  0x41   : > { %1065 = vmatpush1.bf16.msra.mxu0 %v2247_v53  ;;  %1204 = vmatprep.subr.bf16.mxu1 %v2311_v7  ;;  %v2271_v16 = vld [vmem:[%s3404_s2 + $0xa0] ss:$8 sps:$4 sm:$0xff]   ;;  %v2323_v17 = vld [vmem:[%s3404_s2 + $0x234] ss:$8 sps:$4 sm:$0xff]   ;;  %v2773_v19 = vshrl.u32 %v447_v13, 7  ;;  %s3098_s18 = sand.u32 1, %s2475_s22  }
  0x42   : > { %1066 = vmatprep.subr.bf16.mxu0 %v2248_v54  ;;  %v2272_v18 = vld [vmem:[%s3404_s2 + $0xb4] ss:$8 sps:$4 sm:$0xff]   ;;  %v2274_v20 = vld [vmem:[%s3404_s2 + $0xb0] ss:$8 sps:$4 sm:$0xff]   ;;  %v383_v21 = vld [vmem:[%s3403_s1] sm:$0xff]  ;;  %s2193_s19 = smul.u32 288, %s3098_s18 }
  0x43   : > { %v386_v22 = vld [vmem:[%s3403_s1 + $0x18] sm:$0xff]  ;;  %v2329_v24 = vld [vmem:[%s3404_s2 + $0x244] ss:$8 sps:$4 sm:$0xff]   ;;  %v2794_v26 = vsub.s32 1, %v2773_v19  ;;  %v405_v27 = vunpack.c.h.bf16 %v383_v21  ;;  %v2331_v29 = vld [vmem:[%s3404_s2 + $0x240] ss:$8 sps:$4 sm:$0xff]   ;;  %v404_v46 = vunpack.c.l.bf16 %v383_v21 }
  0x44   : > { %1205 = vmatpush1.bf16.msra.mxu1 %v2313_v9  ;;  %v2325_v23 = vld [vmem:[%s3404_s2 + $0x230] ss:$8 sps:$4 sm:$0xff]   ;;  %v2275_v25 = vld [vmem:[%s3404_s2 + $0xc4] ss:$8 sps:$4 sm:$0xff]   ;;  %v411_v28 = vunpack.c.h.bf16 %v386_v22  ;;  %v2277_v31 = vld [vmem:[%s3404_s2 + $0xc0] ss:$8 sps:$4 sm:$0xff]   ;;  %v410_v47 = vunpack.c.l.bf16 %v386_v22 }
  0x45   : > { %1067 = vmatpush1.bf16.msra.mxu0 %v2250_v55  ;;  %1206 = vmatprep.subr.bf16.mxu1 %v2317_v14  ;;  %v2278_v32 = vld [vmem:[%s3404_s2 + $0xd4] ss:$8 sps:$4 sm:$0xff]   ;;  %v2280_v35 = vld [vmem:[%s3404_s2 + $0xd0] ss:$8 sps:$4 sm:$0xff]   ;;  %v2820_v38 = vsub.s32 0, %v2773_v19  ;;  %v2837_v44 = vld [vmem:[%s3403_s1 + $0x48] sm:$0xff] }
  0x46   : > { %1068 = vmatprep.subr.bf16.mxu0 %v2251_v56  ;;  %v2335_v34 = vld [vmem:[%s3404_s2 + $0x254] ss:$8 sps:$4 sm:$0xff]   ;;  %v2337_v39 = vld [vmem:[%s3404_s2 + $0x250] ss:$8 sps:$4 sm:$0xff]   ;;  %v2281_v40 = vld [vmem:[%s3404_s2 + $0xe4] ss:$8 sps:$4 sm:$0xff]   ;;  %v423_v52 = vunpack.c.h.bf16 %v2837_v44 }
  0x47   : > { %v2341_v41 = vld [vmem:[%s3404_s2 + $0x264] ss:$8 sps:$4 sm:$0xff]   ;;  %v389_v43 = vld [vmem:[%s3403_s1 + $0x30] sm:$0xff]  ;;  %v469_v45 = vsub.s32 5, %v2773_v19  ;;  %v2343_v49 = vld [vmem:[%s3404_s2 + $0x260] ss:$8 sps:$4 sm:$0xff]  }
  0x48   : > { %1207 = vmatpush1.bf16.msra.mxu1 %v2319_v15  ;;  %v2283_v50 = vld [vmem:[%s3404_s2 + $0xe0] ss:$8 sps:$4 sm:$0xff]   ;;  %v417_v51 = vunpack.c.h.bf16 %v389_v43  ;;  %v2347_v53 = vld [vmem:[%s3404_s2 + $0x274] ss:$8 sps:$4 sm:$0xff]   ;;  %v2286_v55 = vld [vmem:[%s3404_s2 + $0xf0] ss:$8 sps:$4 sm:$0xff]   ;;  %v416_v5 = vunpack.c.l.bf16 %v389_v43  ;;  %v422_v15 = vunpack.c.l.bf16 %v2837_v44 }
  0x49   : > { %1069 = vmatpush1.bf16.msra.mxu0 %v2253_v57  ;;  %v2414_v8 = vpop.eup %2413  ;;  %1208 = vmatprep.subr.bf16.mxu1 %v2323_v17  ;;  %v2284_v54 = vld [vmem:[%s3404_s2 + $0xf4] ss:$8 sps:$4 sm:$0xff]   ;;  %v465_v57 = vsub.s32 4, %v2773_v19  ;;  %v2349_v61 = vld [vmem:[%s3404_s2 + $0x270] ss:$8 sps:$4 sm:$0xff]   ;;  %v400_v43 = vld [vmem:[%s3403_s1 + $0x88] sm:$0xff] }
  0x4a   : > { %1070 = vmatprep.subr.bf16.mxu0 %v2254_v58  ;;  %v380_v11 = vadd.f32 1.0, %v2414_v8  ;;  %v2289_v58 = vld [vmem:[%s3404_s2 + $0x104] ss:$8 sps:$4 sm:$0xff]   ;;  %v385_v62 = vld [vmem:[%s3403_s1 + $0x10] sm:$0xff]  ;;  %v2901_v9 = vld [vmem:[%s3403_s1 + $0x58] sm:$0xff]  ;;  %s3101_s20 = scalar_lea.vmem [#allocation2], %s2193_s19 }
  0x4b   : > { %v409_v4 = vunpack.c.h.bf16 %v385_v62  ;;  %v2896_v8 = vld [vmem:[%s3403_s1 + $0x40] sm:$0xff]  ;;  %vm1287_vm1 = vcmask 523264   ;;  %vm1278_vm2 = vcmask 1040384   ;;  %vm1299_vm3 = vcmask 516096   ;;  %s2194_s10 = smul.u32 168, %s3098_s18  ;;  %s1886_s17 = scalar_lea.sflag [#allocation4], %s3098_s18 }
  0x4c   : > { %2415 = vrcp.f32 %v380_v11  ;;  %1209 = vmatpush1.bf16.msra.mxu1 %v2325_v23  ;;  %v2355_v17 = vld [vmem:[%s3404_s2 + $0x280] ss:$8 sps:$4 sm:$0xff]   ;;  %v421_v23 = vunpack.c.h.bf16 %v2896_v8  ;;  %v2295_v44 = vld [vmem:[%s3404_s2 + $0x124] ss:$8 sps:$4 sm:$0xff]   ;;  %s2161_s12 = smul.u32 384, %s1970_s25  ;;  %s2487_s25 = smov [#allocation3]  }
  0x4d   : > { %1071 = vmatpush1.bf16.msra.mxu0 %v2256_v59  ;;  %1210 = vmatprep.subr.bf16.mxu1 %v2329_v24  ;;  %v427_v24 = vunpack.c.h.bf16 %v2901_v9  ;;  %s3328_s11 = scalar_lea.vmem [#allocation3], %s2194_s10 }
  0x4e   : > { %1072 = vmatprep.subr.bf16.mxu0 %v2257_v60  ;;  %s1899_s13 = sshll.u32 %s3328_s11, 4  ;;  %s3356_s16 = scalar_lea.hbm %s3408_s6, %s2161_s12  ;;  %s3358_s13 = int_to_ptr.vmem [resolvable:$true] %s1899_s13 }
  0x4f   : > { %s2421_s19 = scalar_lea.vmem %s3358_s13, 2688 }
  0x50   : > { %1211 = vmatpush1.bf16.msra.mxu1 %v2331_v29  ;;  %p2422_p13 = scmp.ne.s32.totalorder %s3358_s13, %s2421_s19 }
  0x51   : > { %1073 = vmatpush1.bf16.msra.mxu0 %v2259_v63  ;;  %1212 = vmatprep.subr.bf16.mxu1 %v2335_v34 }
  0x52   : > { %1074 = vmatprep.subr.bf16.mxu0 %v2260_v0  ;;  %p2423_p0 = pnand %p2422_p13, %p2564_p6 }
  0x54   : > { %1213 = vmatpush1.bf16.msra.mxu1 %v2337_v39  ;;  %v2290_v39 = vld [vmem:[%s3404_s2 + $0x110] ss:$8 sps:$4 sm:$0xff]   ;;  %p2424_p1 = pneg %p2423_p0 }
  0x55   : > { %1075 = vmatpush1.bf16.msra.mxu0 %v2262_v1  ;;  %1214 = vmatprep.subr.bf16.mxu1 %v2341_v41  ;;  %v2880_v1 = vld [vmem:[%s3403_s1 + $0x60] sm:$0xff] }
  0x56   : > { %1076 = vmatprep.subr.bf16.mxu0 %v2263_v2  ;;  %v2799_v30 = vpop.eup %2415  ;;  %v2353_v2 = vld [vmem:[%s3404_s2 + $0x284] ss:$8 sps:$4 sm:$0xff]  }
  0x57   : > { %v2809_v33 = vrot.slane %v2799_v30, %v2794_v26  ;;  %v2842_v48 = vrot.slane %v2799_v30, %v2820_v38  ;;  %v2861_v56 = vrot.slane %v2799_v30, %v469_v45  ;;  %v2905_v13 = vrot.slane %v2799_v30, %v465_v57  ;;  %v2293_v57 = vld [vmem:[%s3404_s2 + $0x120] ss:$8 sps:$4 sm:$0xff]  }
  0x58   : > { %1215 = vmatpush1.bf16.msra.mxu1 %v2343_v49  ;;  %v428_v45 = vunpack.c.l.bf16 %v2880_v1 }
  0x59   : > { %1077 = vmatpush1.bf16.msra.mxu0 %v2265_v3  ;;  %v478_v36 = vmul.f32 %v2809_v33, %v405_v27  ;;  %v484_v37 = vmul.f32 %v2809_v33, %v411_v28  ;;  %v477_v59 = vmul.f32 %v2842_v48, %v404_v46  ;;  %v483_v60 = vmul.f32 %v2842_v48, %v410_v47  ;;  %v388_v3 = vld [vmem:[%s3403_s1 + $0x28] sm:$0xff]  ;;  %v2359_v27 = vld [vmem:[%s3404_s2 + $0x294] ss:$8 sps:$4 sm:$0xff]  }
  0x5a   : > { %1078 = vmatprep.subr.bf16.mxu0 %v2266_v6  ;;  %v490_v63 = vmul.f32 %v2809_v33, %v417_v51  ;;  %v496_v0 = vmul.f32 %v2809_v33, %v423_v52  ;;  %1216 = vmatprep.subr.bf16.mxu1 %v2347_v53  ;;  %v2891_v6 = vld [vmem:[%s3403_s1 + $0x78] sm:$0xff]  ;;  %v415_v7 = vunpack.c.h.bf16 %v388_v3  ;;  %v414_v11 = vunpack.c.l.bf16 %v388_v3  ;;  %v401_v46 = vld [vmem:[%s3403_s1 + $0x90] sm:$0x11] }
  0x5b   : > { %v520_v42 = vpack.c.bf16 %v484_v37, %v478_v36  ;;  %v519_v14 = vpack.c.bf16 %v483_v60, %v477_v59  ;;  %v435_v22 = vunpack.c.h.bf16 %v2891_v6  ;;  %v489_v28 = vmul.f32 %v2842_v48, %v416_v5  ;;  %v2298_v60 = vld [vmem:[%s3404_s2 + $0x134] ss:$8 sps:$4 sm:$0xff]   ;;  %v2296_v3 = vld [vmem:[%s3404_s2 + $0x130] ss:$8 sps:$4 sm:$0xff]  }
  0x5c   : > { %1217 = vmatpush1.bf16.msra.mxu1 %v2349_v61  ;;  %v526_v21 = vpack.c.bf16 %v496_v0, %v490_v63  ;;  %v495_v34 = vmul.f32 %v2842_v48, %v422_v15  ;;  %v494_v36 = vmul.f32 %v2861_v56, %v421_v23  ;;  %v500_v37 = vmul.f32 %v2861_v56, %v427_v24  ;;  %v2304_v23 = vld [vmem:[%s3404_s2 + $0x154] ss:$8 sps:$4 sm:$0xff]  }
  0x5d   : > { %1079 = vmatpush1.bf16.msra.mxu0 %v2268_v10  ;;  %1092 = vmatprep.mubr.bf16.mxu0 %v520_v42  ;;  %v408_v10 = vunpack.c.l.bf16 %v385_v62  ;;  %v508_v41 = vmul.f32 %v2809_v33, %v435_v22  ;;  %v397_v42 = vld [vmem:[%s3403_s1 + $0x70] sm:$0xff]  ;;  %v434_v47 = vunpack.c.l.bf16 %v2891_v6  ;;  %v426_v51 = vunpack.c.l.bf16 %v2901_v9  ;;  %v403_v6 = vld [vmem:[%s3403_s1 + $0xa0] sm:$0x11] }
  0x5e   : > { %1080 = vmatprep.subr.bf16.mxu0 %v2269_v12  ;;  %v482_v12 = vmul.f32 %v2861_v56, %v409_v4  ;;  %1218 = vmatprep.subr.bf16.mxu1 %v2353_v2  ;;  %v525_v52 = vpack.c.bf16 %v495_v34, %v489_v28  ;;  %v530_v53 = vpack.c.bf16 %v500_v37, %v494_v36  ;;  %v441_v59 = vunpack.c.h.bf16 %v401_v46  ;;  %v2310_v34 = vld [vmem:[%s3404_s2 + $0x164] ss:$8 sps:$4 sm:$0xff]  }
  0x5f   : > { %v501_v61 = vmul.f32 %v2842_v48, %v428_v45  ;;  %v499_v63 = vmul.f32 %v2905_v13, %v426_v51  ;;  %v507_v0 = vmul.f32 %v2842_v48, %v434_v47  ;;  %v461_v5 = vsub.s32 3, %v2773_v19  ;;  %v2328_v45 = vld [vmem:[%s3404_s2 + $0x194] ss:$8 sps:$4 sm:$0xff]   ;;  %v2334_v47 = vld [vmem:[%s3404_s2 + $0x1a4] ss:$8 sps:$4 sm:$0xff]  }
  0x60   : > { %1219 = vmatpush1.bf16.msra.mxu1 %v2355_v17  ;;  %v514_v4 = vmul.f32 %v2809_v33, %v441_v59  ;;  %v2299_v17 = vld [vmem:[%s3404_s2 + $0x140] ss:$8 sps:$4 sm:$0xff]   ;;  %v2338_v51 = vld [vmem:[%s3404_s2 + $0x1b0] ss:$8 sps:$4 sm:$0xff]  }
  0x61   : > { %1081 = vmatpush1.bf16.msra.mxu0 %v2271_v16  ;;  %v429_v16 = vunpack.c.h.bf16 %v2880_v1  ;;  %1220 = vmatprep.subr.bf16.mxu1 %v2359_v27  ;;  %v2996_v22 = vrot.slane %v2799_v30, %v461_v5  ;;  %v390_v59 = vld [vmem:[%s3403_s1 + $0x38] sm:$0xff] }
  0x62   : > { %1082 = vmatprep.subr.bf16.mxu0 %v2272_v18  ;;  %v488_v18 = vmul.f32 %v2861_v56, %v415_v7  ;;  %v2301_v7 = vld [vmem:[%s3404_s2 + $0x144] ss:$8 sps:$4 sm:$0xff]  }
  0x64   : > { %v524_v29 = vpack.c.bf16 %v488_v18, %v482_v12  ;;  %v531_v12 = vpack.c.bf16 %v507_v0, %v501_v61  ;;  %v538_v18 = vpack.c.bf16 %v514_v4, %v514_v4  ;;  %v2356_v0 = vld [vmem:[%s3404_s2 + $0x1e0] ss:$8 sps:$4 sm:$0xff]  }
  0x65   : > { %1083 = vmatpush1.bf16.msra.mxu0 %v2274_v20  ;;  %v2287_v20 = vld [vmem:[%s3404_s2 + $0x100] ss:$8 sps:$4 sm:$0xff]  }
  0x66   : > { %1084 = vmatprep.subr.bf16.mxu0 %v2275_v25  ;;  %v2292_v25 = vld [vmem:[%s3404_s2 + $0x114] ss:$8 sps:$4 sm:$0xff]   ;;  %2109 = vmatprep.mubr.msk.bf16.mxu1 %vm1047_vm0, %v524_v29  ;;  %v2302_v29 = vld [vmem:[%s3404_s2 + $0x150] ss:$8 sps:$4 sm:$0xff]  }
  0x69   : > { %1085 = vmatpush1.bf16.msra.mxu0 %v2277_v31  ;;  %v481_v31 = vmul.f32 %v2905_v13, %v408_v10  ;;  %v432_v10 = vunpack.c.l.bf16 %v397_v42 }
  0x6a   : > { %1086 = vmatprep.subr.bf16.mxu0 %v2278_v32  ;;  %v487_v32 = vmul.f32 %v2905_v13, %v414_v11  ;;  %v438_v11 = vunpack.c.l.bf16 %v400_v43 }
  0x6b   : > { %v505_v24 = vmul.f32 %v2905_v13, %v432_v10  ;;  %v418_v10 = vunpack.c.l.bf16 %v390_v59 }
  0x6c   : > { %v523_v49 = vpack.c.bf16 %v487_v32, %v481_v31 }
  0x6d   : > { %1087 = vmatpush1.bf16.msra.mxu0 %v2280_v35  ;;  %v2361_v35 = vld [vmem:[%s3404_s2 + $0x290] ss:$8 sps:$4 sm:$0xff]  }
  0x6e   : > { %1088 = vmatprep.subr.bf16.mxu0 %v2281_v40  ;;  %v502_v40 = vmul.f32 %v2809_v33, %v429_v16  ;;  %1221 = vmatpush1.bf16.msra.mxu1 %v2361_v35  ;;  %v2988_v33 = vld [vmem:[%s3403_s1 + $0x20] sm:$0xff]  ;;  %v445_v16 = vunpack.c.h.bf16 %v403_v6  ;;  %v444_v35 = vunpack.c.l.bf16 %v403_v6  ;;  %v2362_v6 = vld [vmem:[%s3404_s2 + $0x1f0] ss:$8 sps:$4 sm:$0xff]  }
  0x70   : > { %v518_v28 = vmul.f32 %v2861_v56, %v445_v16 }
  0x71   : > { %1089 = vmatpush1.bf16.msra.mxu0 %v2283_v50  ;;  %v420_v50 = vunpack.c.l.bf16 %v2896_v8  ;;  %1235 = vmatmul.mubr.bf16.vlgmr.msra.gmra.mrb[0].mxu1 %v523_v49  ;;  %v2983_v8 = vld [vmem:[%s3403_s1 + $0x8] sm:$0xff] }
  0x72   : > { %1090 = vmatprep.subr.bf16.mxu0 %v2284_v54  ;;  %v433_v54 = vunpack.c.h.bf16 %v397_v42  ;;  %2110 = vmatprep.mubr.msk.bf16.mxu1 %vm1047_vm0, %v530_v53  ;;  %v542_v37 = vpack.c.bf16 %v518_v28, %v518_v28  ;;  %v2314_v42 = vld [vmem:[%s3404_s2 + $0x170] ss:$8 sps:$4 sm:$0xff]   ;;  %v2332_v49 = vld [vmem:[%s3404_s2 + $0x1a0] ss:$8 sps:$4 sm:$0xff]   ;;  %v406_v61 = vunpack.c.l.bf16 %v2983_v8 }
  0x73   : > { %v493_v62 = vmul.f32 %v2905_v13, %v420_v50  ;;  %v2340_v50 = vld [vmem:[%s3404_s2 + $0x1b4] ss:$8 sps:$4 sm:$0xff]   ;;  %v2344_v53 = vld [vmem:[%s3404_s2 + $0x1c0] ss:$8 sps:$4 sm:$0xff]  }
  0x74   : > { %v506_v1 = vmul.f32 %v2861_v56, %v433_v54  ;;  %v2352_v54 = vld [vmem:[%s3404_s2 + $0x1d4] ss:$8 sps:$4 sm:$0xff]  }
  0x75   : > { %1091 = vmatpush1.bf16.msra.mxu0 %v2286_v55  ;;  %v439_v55 = vunpack.c.h.bf16 %v400_v43  ;;  %v529_v9 = vpack.c.bf16 %v499_v63, %v493_v62  ;;  %v2322_v43 = vld [vmem:[%s3404_s2 + $0x184] ss:$8 sps:$4 sm:$0xff]   ;;  %v412_v62 = vunpack.c.l.bf16 %v2988_v33 }
  0x76   : > { %1131 = vmatprep.subr.bf16.mxu0 %v2289_v58  ;;  %v532_v58 = vpack.c.bf16 %v508_v41, %v502_v40  ;;  %v2316_v40 = vld [vmem:[%s3404_s2 + $0x174] ss:$8 sps:$4 sm:$0xff]   ;;  %v517_v41 = vmul.f32 %v2905_v13, %v444_v35 }
  0x77   : > { %v512_v2 = vmul.f32 %v2861_v56, %v439_v55  ;;  %v2308_v56 = vld [vmem:[%s3404_s2 + $0x160] ss:$8 sps:$4 sm:$0xff]   ;;  %v457_v55 = vsub.s32 2, %v2773_v19 }
  0x78   : > { %1093 = vmatmul.mubr.bf16.vlgmr.msra.gmra.mrb[0].mxu0 %v519_v14  ;;  %v440_v14 = vunpack.c.l.bf16 %v401_v46  ;;  %v2326_v46 = vld [vmem:[%s3404_s2 + $0x190] ss:$8 sps:$4 sm:$0xff]  }
  0x79   : > { %1132 = vmatpush1.bf16.msra.mxu0 %v2287_v20  ;;  %1102 = vmatprep.mubr.bf16.mxu0 %v526_v21  ;;  %v536_v15 = vpack.c.bf16 %v512_v2, %v506_v1  ;;  %v407_v20 = vunpack.c.h.bf16 %v2983_v8  ;;  %v413_v21 = vunpack.c.h.bf16 %v2988_v33  ;;  %v458_v63 = vrot.slane %v2799_v30, %v457_v55  ;;  %v396_v8 = vld [vmem:[%s3403_s1 + $0x68] sm:$0xff]  ;;  %v399_v33 = vld [vmem:[%s3403_s1 + $0x80] sm:$0xff] }
  0x7a   : > { %1133 = vmatprep.subr.bf16.mxu0 %v2292_v25  ;;  %1245 = vmatmul.mubr.bf16.gmra.mrb[4].mxu1 %v529_v9  ;;  %v511_v25 = vmul.f32 %v2905_v13, %v438_v11  ;;  %v513_v27 = vmul.f32 %v2842_v48, %v440_v14  ;;  %v2320_v13 = vld [vmem:[%s3404_s2 + $0x180] ss:$8 sps:$4 sm:$0xff]   ;;  %v419_v1 = vunpack.c.h.bf16 %v390_v59  ;;  %v431_v14 = vunpack.c.h.bf16 %v396_v8 }
  0x7b   : > { %2111 = vmatprep.mubr.msk.bf16.mxu1 %vm1047_vm0, %v536_v15  ;;  %v480_v31 = vmul.f32 %v2996_v22, %v407_v20  ;;  %v486_v32 = vmul.f32 %v2996_v22, %v413_v21  ;;  %v479_v4 = vmul.f32 %v458_v63, %v406_v61  ;;  %v485_v5 = vmul.f32 %v458_v63, %v412_v62  ;;  %v402_v21 = vld [vmem:[%s3403_s1 + $0x98] sm:$0x11]  ;;  %v2385_v62 = vld [vmem:[%s3101_s20 + $0x94] ss:$12 sps:$4 sm:$0xff]  }
  0x7c   : > { %v535_v48 = vpack.c.bf16 %v511_v25, %v505_v24  ;;  %v537_v36 = vpack.c.bf16 %v513_v27, %v513_v27  ;;  %v492_v30 = vmul.f32 %v2996_v22, %v419_v1  ;;  %v437_v15 = vunpack.c.h.bf16 %v399_v33  ;;  %v2382_v59 = vld [vmem:[%s3101_s20 + $0x7c] ss:$12 sps:$4 sm:$0xff]   ;;  %v2380_v61 = vld [vmem:[%s3101_s20 + $0x78] ss:$12 sps:$4 sm:$0xff]  }
  0x7d   : > { %1134 = vmatpush1.bf16.msra.mxu0 %v2290_v39  ;;  %v522_v39 = vpack.c.bf16 %v486_v32, %v480_v31  ;;  %v521_v9 = vpack.c.bf16 %v485_v5, %v479_v4  ;;  %v491_v16 = vmul.f32 %v458_v63, %v418_v10  ;;  %v430_v24 = vunpack.c.l.bf16 %v396_v8  ;;  %v2386_v5 = vld [vmem:[%s3101_s20 + $0xa8] ss:$12 sps:$4 sm:$0xff]   ;;  %v2392_v8 = vld [vmem:[%s3101_s20 + $0xd8] ss:$12 sps:$4 sm:$0xff]  }
  0x7e   : > { %1135 = vmatprep.subr.bf16.mxu0 %v2295_v44  ;;  %v541_v44 = vpack.c.bf16 %v517_v41, %v517_v41  ;;  %v510_v20 = vmul.f32 %v2996_v22, %v437_v15  ;;  %v436_v25 = vunpack.c.l.bf16 %v399_v33  ;;  %v443_v28 = vunpack.c.h.bf16 %v402_v21  ;;  %v2397_v33 = vld [vmem:[%s3101_s20 + $0xf4] ss:$12 sps:$4 sm:$0xff]   ;;  %v2400_v10 = vld [vmem:[%s3101_s20 + $0x10c] ss:$12 sps:$4 sm:$0xff]  }
  0x80   : > { %1103 = vmatmul.mubr.bf16.gmra.mrb[4].mxu0 %v525_v52  ;;  %v2346_v52 = vld [vmem:[%s3404_s2 + $0x1c4] ss:$8 sps:$4 sm:$0xff]   ;;  %v509_v31 = vmul.f32 %v458_v63, %v436_v25  ;;  %v516_v32 = vmul.f32 %v2996_v22, %v443_v28 }
  0x81   : > { %1136 = vmatpush1.bf16.msra.mxu0 %v2293_v57  ;;  %1112 = vmatprep.mubr.bf16.mxu0 %v532_v58  ;;  %v2350_v57 = vld [vmem:[%s3404_s2 + $0x1d0] ss:$8 sps:$4 sm:$0xff]   ;;  %v2358_v58 = vld [vmem:[%s3404_s2 + $0x1e4] ss:$8 sps:$4 sm:$0xff]  }
  0x82   : > { %1137 = vmatprep.subr.bf16.mxu0 %v2298_v60  ;;  %1255 = vmatmul.mubr.bf16.gmra.mrb[8].mxu1 %v535_v48  ;;  %v393_v60 = vld [vmem:[%s3403_s1 + $0x50] sm:$0xff]  ;;  %v442_v48 = vunpack.c.l.bf16 %v402_v21  ;;  %v540_v35 = vpack.c.bf16 %v516_v32, %v516_v32 }
  0x83   : > { %2112 = vmatprep.mubr.msk.bf16.mxu1 %vm1047_vm0, %v542_v37  ;;  %v425_v2 = vunpack.c.h.bf16 %v393_v60  ;;  %v424_v11 = vunpack.c.l.bf16 %v393_v60 }
  0x85   : > { %1138 = vmatpush1.bf16.msra.mxu0 %v2296_v3  ;;  %v2364_v3 = vld [vmem:[%s3404_s2 + $0x1f4] ss:$8 sps:$4 sm:$0xff]  }
  0x86   : > { %1139 = vmatprep.subr.bf16.mxu0 %v2301_v7  ;;  %v498_v7 = vmul.f32 %v2996_v22, %v425_v2 }
  0x88   : > { %1113 = vmatmul.mubr.bf16.gmra.mrb[8].mxu0 %v531_v12  ;;  %v528_v12 = vpack.c.bf16 %v498_v7, %v492_v30  ;;  %v2389_v30 = vld [vmem:[%s3101_s20 + $0xc0] ss:$12 sps:$4 sm:$0xff]   ;;  %v2394_v7 = vld [vmem:[%s3101_s20 + $0xdc] ss:$12 sps:$4 sm:$0xff]  }
  0x89   : > { %1140 = vmatpush1.bf16.msra.mxu0 %v2299_v17  ;;  %1122 = vmatprep.mubr.bf16.mxu0 %v538_v18  ;;  %v497_v17 = vmul.f32 %v458_v63, %v424_v11  ;;  %v504_v18 = vmul.f32 %v2996_v22, %v431_v14  ;;  %v2367_v22 = vld [vmem:[%s3101_s20 + $0x4] ss:$12 sps:$4 sm:$0xff]   ;;  %v2398_v11 = vld [vmem:[%s3101_s20 + $0x108] ss:$12 sps:$4 sm:$0xff]  }
  0x8a   : > { %1141 = vmatprep.subr.bf16.mxu0 %v2304_v23  ;;  %1265 = vmatmul.mubr.bf16.gmra.mrb[12].mxu1 %v541_v44  ;;  %v2368_v44 = vld [vmem:[%s3101_s20 + $0x18] ss:$12 sps:$4 sm:$0xff]  }
  0x8b   : > { %v527_v23 = vpack.c.bf16 %v497_v17, %v491_v16  ;;  %v534_v27 = vpack.c.bf16 %v510_v20, %v504_v18  ;;  %1729 = vmatprep.subr.bf16.mxu1 %v2367_v22 }
  0x8d   : > { %1142 = vmatpush1.bf16.msra.mxu0 %v2302_v29  ;;  %v503_v29 = vmul.f32 %v458_v63, %v430_v24 }
  0x8e   : > { %1143 = vmatprep.subr.bf16.mxu0 %v2310_v34 }
  0x8f   : > { %v533_v34 = vpack.c.bf16 %v509_v31, %v503_v29 }
  0x90   : > { %1123 = vmatmul.mubr.bf16.gmra.mrb[12].mxu0 %v537_v36  ;;  %v515_v36 = vmul.f32 %v458_v63, %v442_v48  ;;  %v2383_v63 = vld [vmem:[%s3101_s20 + $0x90] ss:$12 sps:$4 sm:$0xff]  }
  0x91   : > { %1144 = vmatpush1.bf16.msra.mxu0 %v2308_v56  ;;  %1163 = vmatprep.mubr.bf16.mxu0 %v522_v39  ;;  %v2365_v56 = vld [vmem:[%s3101_s20] ss:$12 sps:$4 sm:$0xff]  }
  0x92   : > { %1145 = vmatprep.subr.bf16.mxu0 %v2316_v40  ;;  %v539_v37 = vpack.c.bf16 %v515_v36, %v515_v36  ;;  %1730 = vmatpush1.bf16.msra.mxu1 %v2365_v56 }
  0x95   : > { %1146 = vmatpush1.bf16.msra.mxu0 %v2314_v42  ;;  %v2370_v42 = vld [vmem:[%s3101_s20 + $0x1c] ss:$12 sps:$4 sm:$0xff]  }
  0x96   : > { %1147 = vmatprep.subr.bf16.mxu0 %v2322_v43  ;;  %1731 = vmatprep.subr.bf16.mxu1 %v2370_v42 }
  0x97   : > { %1732 = vmatpush1.bf16.msra.mxu1 %v2368_v44 }
  0x99   : > { %1148 = vmatpush1.bf16.msra.mxu0 %v2320_v13  ;;  %v2373_v13 = vld [vmem:[%s3101_s20 + $0x34] ss:$12 sps:$4 sm:$0xff]  }
  0x9a   : > { %1149 = vmatprep.subr.bf16.mxu0 %v2328_v45  ;;  %v2371_v45 = vld [vmem:[%s3101_s20 + $0x30] ss:$12 sps:$4 sm:$0xff]   ;;  %1733 = vmatprep.subr.bf16.mxu1 %v2373_v13 }
  0x9b   : > { %1734 = vmatpush1.bf16.msra.mxu1 %v2371_v45 }
  0x9d   : > { %1150 = vmatpush1.bf16.msra.mxu0 %v2326_v46 }
  0x9e   : > { %1151 = vmatprep.subr.bf16.mxu0 %v2334_v47 }
  0xa1   : > { %1152 = vmatpush1.bf16.msra.mxu0 %v2332_v49 }
  0xa2   : > { %1153 = vmatprep.subr.bf16.mxu0 %v2340_v50  ;;  %v2376_v50 = vld [vmem:[%s3101_s20 + $0x4c] ss:$12 sps:$4 sm:$0xff]  }
  0xa3   : > { %1735 = vmatprep.subr.bf16.mxu1 %v2376_v50 }
  0xa5   : > { %1154 = vmatpush1.bf16.msra.mxu0 %v2338_v51 }
  0xa6   : > { %1155 = vmatprep.subr.bf16.mxu0 %v2346_v52  ;;  %v2374_v52 = vld [vmem:[%s3101_s20 + $0x48] ss:$12 sps:$4 sm:$0xff]  }
  0xa7   : > { %1736 = vmatpush1.bf16.msra.mxu1 %v2374_v52 }
  0xa9   : > { %1156 = vmatpush1.bf16.msra.mxu0 %v2344_v53  ;;  %v2379_v53 = vld [vmem:[%s3101_s20 + $0x64] ss:$12 sps:$4 sm:$0xff]  }
  0xaa   : > { %1157 = vmatprep.subr.bf16.mxu0 %v2352_v54  ;;  %v2377_v54 = vld [vmem:[%s3101_s20 + $0x60] ss:$12 sps:$4 sm:$0xff]   ;;  %1737 = vmatprep.subr.bf16.mxu1 %v2379_v53 }
  0xab   : > { %1738 = vmatpush1.bf16.msra.mxu1 %v2377_v54 }
  0xac   : > { %1739 = vmatprep.subr.bf16.mxu1 %v2382_v59 }
  0xad   : > { %1158 = vmatpush1.bf16.msra.mxu0 %v2350_v57 }
  0xae   : > { %1159 = vmatprep.subr.bf16.mxu0 %v2358_v58 }
  0xaf   : > { %1740 = vmatpush1.bf16.msra.mxu1 %v2380_v61 }
  0xb0   : > { %1741 = vmatprep.subr.bf16.mxu1 %v2385_v62 }
  0xb1   : > { %1160 = vmatpush1.bf16.msra.mxu0 %v2356_v0 }
  0xb2   : > { %1161 = vmatprep.subr.bf16.mxu0 %v2364_v3  ;;  %v2388_v3 = vld [vmem:[%s3101_s20 + $0xac] ss:$12 sps:$4 sm:$0xff]  }
  0xb3   : > { %1742 = vmatpush1.bf16.msra.mxu1 %v2383_v63 }
  0xb4   : > { %1743 = vmatprep.subr.bf16.mxu1 %v2388_v3 }
  0xb5   : > { %1162 = vmatpush1.bf16.msra.mxu0 %v2362_v6  ;;  %v2391_v6 = vld [vmem:[%s3101_s20 + $0xc4] ss:$12 sps:$4 sm:$0xff]  }
  0xb7   : > { %1744 = vmatpush1.bf16.msra.mxu1 %v2386_v5 }
  0xb8   : > { %1164 = vmatmul.mubr.bf16.vlgmr.msra.gmra.mrb[0].mxu0 %v521_v9  ;;  %1745 = vmatprep.subr.bf16.mxu1 %v2391_v6  ;;  %v2395_v9 = vld [vmem:[%s3101_s20 + $0xf0] ss:$12 sps:$4 sm:$0xff]  }
  0xb9   : > { %1173 = vmatprep.mubr.bf16.mxu0 %v528_v12  ;;  %v2485_v12 = vmov 0  }
  0xbb   : > { %1746 = vmatpush1.bf16.msra.mxu1 %v2389_v30 }
  0xbc   : > { %1747 = vmatprep.subr.bf16.mxu1 %v2394_v7 }
  0xbf   : > { %1748 = vmatpush1.bf16.msra.mxu1 %v2392_v8 }
  0xc0   : > { %1174 = vmatmul.mubr.bf16.gmra.mrb[4].mxu0 %v527_v23  ;;  %1749 = vmatprep.subr.bf16.mxu1 %v2397_v33 }
  0xc1   : > { %1183 = vmatprep.mubr.bf16.mxu0 %v534_v27 }
  0xc3   : > { %1750 = vmatpush1.bf16.msra.mxu1 %v2395_v9 }
  0xc4   : > { %1751 = vmatprep.subr.bf16.mxu1 %v2400_v10 }
  0xc7   : > { %1752 = vmatpush1.bf16.msra.mxu1 %v2398_v11 }
  0xc8   : > { %1184 = vmatmul.mubr.bf16.gmra.mrb[8].mxu0 %v533_v34  ;;  %1800 = vmatprep.subr.bf16.mxu1 %v2485_v12 }
  0xc9   : > { %1193 = vmatprep.mubr.bf16.mxu0 %v540_v35 }
  0xd0   : > { %1194 = vmatmul.mubr.bf16.gmra.mrb[12].mxu0 %v539_v37 }
 0x144   : > { %v3105_v39 = vpop.f32.mrb[0].mxu1 }
 0x145   : > { %v3107_v40 = vpop.f32.mrb[1].mxu1 }
 0x146   : > { %v3109_v41 = vpop.f32.mrb[2].mxu1 }
 0x147   : > { %v3112_v43 = vpop.f32.mrb[3].mxu1 }
 0x14d   : > { %v1246_v46 = vpop.f32.mrb[4].mxu1 }
 0x14e   : > { %v1248_v47 = vpop.f32.mrb[5].mxu1 }
 0x14f   : > { %v1250_v49 = vpop.f32.mrb[6].mxu1 }
 0x150   : > { %v3118_v51 = vpop.f32.mrb[7].mxu1 }
 0x155   : > { %v3123_v55 = vpop.f32.mrb[8].mxu1 }
 0x156   : > { %v3125_v57 = vpop.f32.mrb[9].mxu1 }
 0x157   : > { %v3127_v58 = vpop.f32.mrb[10].mxu1 }
 0x158   : > { %v3130_v60 = vpop.f32.mrb[11].mxu1 }
 0x15d   : > { %v3135_v0 = vpop.f32.mrb[12].mxu1 }
 0x15e   : > { %v3137_v1 = vpop.f32.mrb[13].mxu1 }
 0x15f   : > { %v1270_v2 = vpop.f32.mrb[14].mxu1 }
 0x160   : > { %v1271_v4 = vpop.f32.mrb[15].mxu1 }
 0x18b   : > { %v1165_v14 = vpop.f32.mrb[0].mxu0 }
 0x18c   : > { %v3151_v15 = vadd.f32 %v3105_v39, %v1165_v14  ;;  %v1167_v16 = vpop.f32.mrb[1].mxu0 }
 0x18d   : > { %v3154_v17 = vadd.f32 %v3107_v40, %v1167_v16  ;;  %v1169_v18 = vpop.f32.mrb[2].mxu0 }
 0x18e   : > { %v3157_v20 = vadd.f32 %v3109_v41, %v1169_v18  ;;  %v1171_v21 = vpop.f32.mrb[3].mxu0 }
 0x18f   : > { %v3160_v23 = vadd.f32 %v3112_v43, %v1171_v21  ;;  %v1288_v35 = vsel %vm1287_vm1, %v3154_v17, 0.0 }
 0x190   : > { %v1273_v36 = vadd.f32 %v3157_v20, %v3151_v15 }
 0x191   : > { %v1289_v34 = vsel %vm1287_vm1, %v3160_v23, 0.0 }
 0x192   : > { %v1290_v22 = vadd.f32 %v1289_v34, %v1288_v35 }
 0x193   : > { %v1175_v24 = vpop.f32.mrb[4].mxu0 }
 0x194   : > { %v3162_v25 = vadd.f32 %v1246_v46, %v1175_v24  ;;  %v1177_v27 = vpop.f32.mrb[5].mxu0 }
 0x195   : > { %v3164_v28 = vadd.f32 %v1248_v47, %v1177_v27  ;;  %v1179_v29 = vpop.f32.mrb[6].mxu0 }
 0x196   : > { %v3166_v31 = vadd.f32 %v1250_v49, %v1179_v29  ;;  %v1181_v32 = vpop.f32.mrb[7].mxu0  ;;  %v1274_v56 = vadd.f32 %v3162_v25, %v1273_v36 }
 0x197   : > { %v3171_v48 = vadd.f32 %v3118_v51, %v1181_v32  ;;  %v1291_v37 = vsel %vm1287_vm1, %v3164_v28, 0.0 }
 0x198   : > { %v1292_v40 = vadd.f32 %v1291_v37, %v1290_v22  ;;  %v1275_v47 = vadd.f32 %v3166_v31, %v1274_v56 }
 0x199   : > { %v1293_v43 = vsel %vm1287_vm1, %v3171_v48, 0.0 }
 0x19a   : > { %v1294_v51 = vadd.f32 %v1293_v43, %v1292_v40 }
 0x19b   : > { %v1185_v39 = vpop.f32.mrb[8].mxu0 }
 0x19c   : > { %v3181_v41 = vadd.f32 %v3123_v55, %v1185_v39  ;;  %v1187_v42 = vpop.f32.mrb[9].mxu0 }
 0x19d   : > { %v3186_v44 = vadd.f32 %v3125_v57, %v1187_v42  ;;  %v1189_v13 = vpop.f32.mrb[10].mxu0 }
 0x19e   : > { %v3189_v45 = vadd.f32 %v3127_v58, %v1189_v13  ;;  %v1191_v46 = vpop.f32.mrb[11].mxu0  ;;  %v1276_v52 = vadd.f32 %v3181_v41, %v1275_v47 }
 0x19f   : > { %v1295_v49 = vsel %vm1287_vm1, %v3186_v44, 0.0  ;;  %v3195_v50 = vadd.f32 %v3130_v60, %v1191_v46 }
 0x1a0   : > { %v1296_v53 = vadd.f32 %v1295_v49, %v1294_v51  ;;  %v1277_v59 = vadd.f32 %v3189_v45, %v1276_v52 }
 0x1a1   : > { %v1297_v54 = vsel %vm1287_vm1, %v3195_v50, 0.0 }
 0x1a2   : > { %v1298_v62 = vadd.f32 %v1297_v54, %v1296_v53 }
 0x1a3   : > { %v1195_v55 = vpop.f32.mrb[12].mxu0 }
 0x1a4   : > { %v3201_v57 = vadd.f32 %v3135_v0, %v1195_v55  ;;  %v1197_v58 = vpop.f32.mrb[13].mxu0 }
 0x1a5   : > { %v3205_v61 = vadd.f32 %v3137_v1, %v1197_v58  ;;  %v1199_v60 = vpop.f32.mrb[14].mxu0 }
 0x1a6   : > { %v1279_v63 = vsel %vm1278_vm2, %v3201_v57, 0.0  ;;  %v1200_v2 = vpop.f32.mrb[15].mxu0 }
 0x1a7   : > { %v1280_v3 = vadd.f32 %v1279_v63, %v1277_v59  ;;  %v1300_v4 = vsel %vm1299_vm3, %v3205_v61, 0.0 }
 0x1a8   : > { %v1301_v5 = vadd.f32 %v1300_v4, %v1298_v62 }
 0x1a9   : > { %v1281_v0 = vrot.slane %v1280_v3, 4 }
 0x1aa   : > { %v1302_v6 = vrot.slane %v1301_v5, 4 }
 0x1ab   : > { %v1282_v30 = vadd.f32 %v1281_v0, %v1280_v3 }
 0x1ac   : > { %v1303_v7 = vadd.f32 %v1302_v6, %v1301_v5 }
 0x1ad   : > { %v1283_v8 = vrot.slane %v1282_v30, 2 }
 0x1ae   : > { %v1304_v33 = vrot.slane %v1303_v7, 2 }
 0x1af   : > { %v1284_v9 = vadd.f32 %v1283_v8, %v1282_v30 }
 0x1b0   : > { %v1305_v1 = vadd.f32 %v1304_v33, %v1303_v7 }
 0x1b1   : > { %v1285_v10 = vrot.slane %v1284_v9, 1 }
 0x1b2   : > { %v1306_v11 = vrot.slane %v1305_v1, 1 }
 0x1b3   : > { %v1286_v14 = vadd.f32 %v1285_v10, %v1284_v9 }
 0x1b4   : > { %v1307_v16 = vadd.f32 %v1306_v11, %v1305_v1 }
 0x1b5   : > { %v3211_v18 = vmul.f32 0.020408163, %v1286_v14 }
 0x1b6   : > { %v3213_v21 = vmul.f32 0.020408163, %v1307_v16 }
 0x1b7   : > { %v1311_v24 = vsub.f32 %v3151_v15, %v3211_v18  ;;  %v1313_v27 = vsub.f32 %v3157_v20, %v3211_v18  ;;  %v1315_v29 = vsub.f32 %v3162_v25, %v3211_v18  ;;  %v1317_v32 = vsub.f32 %v3166_v31, %v3211_v18 }
 0x1b8   : > { %v1312_v34 = vsub.f32 %v3154_v17, %v3213_v21  ;;  %v1319_v37 = vsub.f32 %v3181_v41, %v3211_v18  ;;  %v1314_v22 = vsub.f32 %v3160_v23, %v3213_v21  ;;  %v1316_v40 = vsub.f32 %v3164_v28, %v3213_v21 }
 0x1b9   : > { %v1325_v35 = vmul.f32 %v1311_v24, %v1311_v24  ;;  %v1327_v36 = vmul.f32 %v1313_v27, %v1313_v27  ;;  %v1329_v56 = vmul.f32 %v1315_v29, %v1315_v29  ;;  %v1318_v42 = vsub.f32 %v3171_v48, %v3213_v21 }
 0x1ba   : > { %v1321_v43 = vsub.f32 %v3189_v45, %v3211_v18  ;;  %v1323_v13 = vsub.f32 %v3201_v57, %v3211_v18  ;;  %v1331_v46 = vmul.f32 %v1317_v32, %v1317_v32  ;;  %v1326_v47 = vmul.f32 %v1312_v34, %v1312_v34 }
 0x1bb   : > { %v1339_v39 = vadd.f32 %v1327_v36, %v1325_v35  ;;  %v1320_v51 = vsub.f32 %v3186_v44, %v3213_v21  ;;  %v1328_v52 = vmul.f32 %v1314_v22, %v1314_v22  ;;  %v1330_v53 = vmul.f32 %v1316_v40, %v1316_v40 }
 0x1bc   : > { %v1333_v54 = vmul.f32 %v1319_v37, %v1319_v37  ;;  %v1352_v55 = vsel %vm1287_vm1, %v1326_v47, 0.0  ;;  %v1322_v59 = vsub.f32 %v3195_v50, %v3213_v21  ;;  %v1332_v60 = vmul.f32 %v1318_v42, %v1318_v42 }
 0x1bd   : > { %v1340_v49 = vadd.f32 %v1339_v39, %v1329_v56  ;;  %v1353_v62 = vsel %vm1287_vm1, %v1328_v52, 0.0  ;;  %v1335_v63 = vmul.f32 %v1321_v43, %v1321_v43  ;;  %v1337_v2 = vmul.f32 %v1323_v13, %v1323_v13 }
 0x1be   : > { %v1354_v3 = vadd.f32 %v1353_v62, %v1352_v55  ;;  %v1324_v5 = vsub.f32 %v3205_v61, %v3213_v21  ;;  %v1334_v0 = vmul.f32 %v1320_v51, %v1320_v51  ;;  %v1355_v6 = vsel %vm1287_vm1, %v1330_v53, 0.0 }
 0x1bf   : > { %v1341_v58 = vadd.f32 %v1340_v49, %v1331_v46  ;;  %v1336_v8 = vmul.f32 %v1322_v59, %v1322_v59  ;;  %v1357_v33 = vsel %vm1287_vm1, %v1332_v60, 0.0  ;;  %v1344_v9 = vsel %vm1278_vm2, %v1337_v2, 0.0  ;;  %v1373_v2 = vld [vmem:[%s3405_s3] sm:$0x3] }
 0x1c0   : > { %v1356_v30 = vadd.f32 %v1355_v6, %v1354_v3  ;;  %v1338_v11 = vmul.f32 %v1324_v5, %v1324_v5  ;;  %v1359_v14 = vsel %vm1287_vm1, %v1334_v0, 0.0  ;;  %v2486_v53 = vmov 1966171168  }
 0x1c1   : > { %v1342_v4 = vadd.f32 %v1341_v58, %v1333_v54  ;;  %v1361_v27 = vsel %vm1287_vm1, %v1336_v8, 0.0  ;;  %v1382_v54 = vunpack.c.l.s4 %v2486_v53  ;;  %v1397_v8 = vld [vmem:[%s3406_s4] sm:$0x3] }
 0x1c2   : > { %v1358_v1 = vadd.f32 %v1357_v33, %v1356_v30  ;;  %v1363_v34 = vsel %vm1299_vm3, %v1338_v11, 0.0 }
 0x1c3   : > { %v1343_v7 = vadd.f32 %v1342_v4, %v1335_v63  ;;  %v1383_v55 = vunpack.c.0.s8 %v1382_v54  ;;  %v2407_v54 = vld [vmem:[%s3101_s20 + $0x98] ss:$12 sps:$4 sm:$0xff]  }
 0x1c4   : > { %v1360_v16 = vadd.f32 %v1359_v14, %v1358_v1 }
 0x1c5   : > { %v1345_v10 = vadd.f32 %v1344_v9, %v1343_v7  ;;  %v1386_v59 = vsub.s32 %v1383_v55, %v2773_v19 }
 0x1c6   : > { %v1362_v29 = vadd.f32 %v1361_v27, %v1360_v16 }
 0x1c7   : > { %v1346_v24 = vrot.slane %v1345_v10, 4 }
 0x1c8   : > { %v1364_v35 = vadd.f32 %v1363_v34, %v1362_v29 }
 0x1c9   : > { %v1347_v32 = vadd.f32 %v1346_v24, %v1345_v10 }
 0x1ca   : > { %v1365_v37 = vrot.slane %v1364_v35, 4 }
 0x1cb   : > { %v1348_v36 = vrot.slane %v1347_v32, 2 }
 0x1cc   : > { %v1366_v56 = vadd.f32 %v1365_v37, %v1364_v35  ;;  %v2401_v35 = vld [vmem:[%s3101_s20 + $0x8] ss:$12 sps:$4 sm:$0xff]  }
 0x1cd   : > { %v1349_v22 = vadd.f32 %v1348_v36, %v1347_v32 }
 0x1ce   : > { %v1367_v40 = vrot.slane %v1366_v56, 2 }
 0x1cf   : > { %v1350_v39 = vrot.slane %v1349_v22, 1 }
 0x1d0   : > { %v1368_v43 = vadd.f32 %v1367_v40, %v1366_v56 }
 0x1d1   : > { %v1351_v42 = vadd.f32 %v1350_v39, %v1349_v22 }
 0x1d2   : > { %v1369_v46 = vrot.slane %v1368_v43, 1 }
 0x1d3   : > { %v1371_v13 = vmul.f32 0.020408163, %v1351_v42 }
 0x1d4   : > { %v1370_v47 = vadd.f32 %v1369_v46, %v1368_v43 }
 0x1d5   : > { %v1374_v49 = vadd.f32 1e-05, %v1371_v13  ;;  %v2404_v13 = vld [vmem:[%s3101_s20 + $0x50] ss:$12 sps:$4 sm:$0xff]  }
 0x1d6   : > { %v1372_v51 = vmul.f32 0.020408163, %v1370_v47 }
 0x1d7   : > { %2417 = vrsqrt.f32 %v1374_v49 }
 0x1d8   : > { %v1375_v52 = vadd.f32 1e-05, %v1372_v51  ;;  %v2405_v51 = vld [vmem:[%s3101_s20 + $0x68] ss:$12 sps:$4 sm:$0xff]  }
 0x1da   : > { %2419 = vrsqrt.f32 %v1375_v52  ;;  %v2406_v52 = vld [vmem:[%s3101_s20 + $0x80] ss:$12 sps:$4 sm:$0xff]  }
 0x1e1   : > { %v2418_v58 = vpop.eup %2417 }
 0x1e4   : > { %v2420_v60 = vpop.eup %2419 }
 0x1e5   : > { %v1380_v62 = vcombine.low %v2418_v58, %v2420_v60  ;;  %v2409_v58 = vld [vmem:[%s3101_s20 + $0xc8] ss:$12 sps:$4 sm:$0xff]   ;;  %v2411_v60 = vld [vmem:[%s3101_s20 + $0xf8] ss:$12 sps:$4 sm:$0xff]  }
 0x1e7   : > { %v1387_v63 = vrot.slane %v1380_v62, %v1386_v59  ;;  %v2412_v62 = vld [vmem:[%s3101_s20 + $0x110] ss:$12 sps:$4 sm:$0xff]  }
 0x1e9   : > { %v1394_v3 = vrot.slane %v1387_v63, %v1386_v59 }
 0x1eb   : > { %v1396_v4 = vmul.f32 %v1394_v3, %v1373_v2 }
 0x1ed   : > { %v3256_v5 = vrot.slane %v1396_v4, %v2820_v38  ;;  %v1406_v0 = vrot.slane %v1396_v4, %v2794_v26 }
 0x1ef   : > { %v1409_v6 = vmul.f32 %v3256_v5, %v3211_v18  ;;  %v1410_v30 = vmul.f32 %v1406_v0, %v3213_v21  ;;  %v1431_v1 = vmul.f32 %v3154_v17, %v1406_v0  ;;  %v1433_v14 = vmul.f32 %v3160_v23, %v1406_v0 }
 0x1f0   : > { %v1430_v18 = vmul.f32 %v3151_v15, %v3256_v5  ;;  %v1432_v21 = vmul.f32 %v3157_v20, %v3256_v5  ;;  %v1435_v16 = vmul.f32 %v3164_v28, %v1406_v0  ;;  %v1437_v24 = vmul.f32 %v3171_v48, %v1406_v0  ;;  %v2402_v48 = vld [vmem:[%s3101_s20 + $0x20] ss:$12 sps:$4 sm:$0xff]  }
 0x1f1   : > { %v1413_v19 = vcombine.low %v1409_v6, %v1410_v30  ;;  %v1434_v20 = vmul.f32 %v3162_v25, %v3256_v5  ;;  %v1436_v28 = vmul.f32 %v3166_v31, %v3256_v5  ;;  %v1439_v36 = vmul.f32 %v3186_v44, %v1406_v0  ;;  %v2403_v25 = vld [vmem:[%s3101_s20 + $0x38] ss:$12 sps:$4 sm:$0xff]  }
 0x1f2   : > { %v1441_v37 = vmul.f32 %v3195_v50, %v1406_v0  ;;  %v1438_v44 = vmul.f32 %v3181_v41, %v3256_v5  ;;  %v1440_v50 = vmul.f32 %v3189_v45, %v3256_v5  ;;  %v1443_v43 = vmul.f32 %v3205_v61, %v1406_v0 }
 0x1f3   : > { %v1420_v7 = vrot.slane %v1413_v19, %v1386_v59  ;;  %v1442_v61 = vmul.f32 %v3201_v57, %v3256_v5  ;;  %v2408_v57 = vld [vmem:[%s3101_s20 + $0xb0] ss:$12 sps:$4 sm:$0xff]  }
 0x1f5   : > { %v1427_v33 = vrot.slane %v1420_v7, %v1386_v59  ;;  %v2410_v59 = vld [vmem:[%s3101_s20 + $0xe0] ss:$12 sps:$4 sm:$0xff]   ;;  %s2425_s20 = sshll.u32 %s2487_s25, 4  ;;  %s2426_s20 = int_to_ptr.vmem [resolvable:$false] %s2425_s20 }
 0x1f6   : > { %s2427_s26 = scalar_lea.vmem %s2426_s20, 5376  ;;  %p2428_p2 = scmp.lt.s32.totalorder %s3358_s13, %s2426_s20 }
 0x1f7   : > { %v1429_v9 = vsub.f32 %v1397_v8, %v1427_v33  ;;  %p2429_p3 = scmp.lt.s32.totalorder %s2427_s26, %s2421_s19 }
 0x1f9   : > { %v1448_v10 = vrot.slane %v1429_v9, %v2820_v38  ;;  %v1452_v11 = vrot.slane %v1429_v9, %v2794_v26  ;;  %p2430_p4 = por %p2429_p3, %p2428_p2 }
 0x1fb   : > { %v1456_v27 = vadd.f32 %v1452_v11, %v1431_v1  ;;  %v1458_v29 = vadd.f32 %v1452_v11, %v1433_v14  ;;  %v1455_v17 = vadd.f32 %v1448_v10, %v1430_v18  ;;  %v1457_v32 = vadd.f32 %v1448_v10, %v1432_v21  ;;  %p2431_p5 = pnand %p2430_p4, %p2424_p1 }
 0x1fc   : > { %v1460_v38 = vadd.f32 %v1452_v11, %v1435_v16  ;;  %v1462_v34 = vadd.f32 %v1452_v11, %v1437_v24  ;;  %v1459_v22 = vadd.f32 %v1448_v10, %v1434_v20  ;;  %v1461_v56 = vadd.f32 %v1448_v10, %v1436_v28 }
 0x1fd   : > { %v1470_v26 = vpack.c.bf16 %v1458_v29, %v1456_v27  ;;  %v3276_v23 = vpack.c.bf16 %v1457_v32, %v1455_v17  ;;  %v1464_v39 = vadd.f32 %v1452_v11, %v1439_v36  ;;  %v1466_v40 = vadd.f32 %v1452_v11, %v1441_v37 }
 0x1fe   : > { %v3279_v15 = vpack.c.bf16 %v1462_v34, %v1460_v38  ;;  %v1471_v31 = vpack.c.bf16 %v1461_v56, %v1459_v22  ;;  %v1463_v46 = vadd.f32 %v1448_v10, %v1438_v44  ;;  %v1465_v47 = vadd.f32 %v1448_v10, %v1440_v50 }
 0x1ff   : > { %2149 = vmatprep.mubr.msk.bf16.mxu1 %vm1287_vm1, %v1470_v26  ;;  %v1474_v42 = vpack.c.bf16 %v1466_v40, %v1464_v39  ;;  %v1468_v49 = vadd.f32 %v1452_v11, %v1443_v43  ;;  %v1467_v53 = vadd.f32 %v1448_v10, %v1442_v61 }
 0x200   : > { %1762 = vmatmul.mubr.bf16.vlgmr.msra.gmra.mrb[16].mxu1 %v3276_v23  ;;  %v1473_v41 = vpack.c.bf16 %v1465_v47, %v1463_v46 }
 0x201   : > { %1801 = vmatpush1.bf16.msra.mxu1 %v2401_v35  ;;  %2150 = vmatprep.mubr.msk.bf16.mxu1 %vm1287_vm1, %v3279_v15  ;;  %v1476_v45 = vpack.c.bf16 %v1468_v49, %v1468_v49  ;;  %v1475_v55 = vpack.c.bf16 %v1467_v53, %v1467_v53 }
 0x202   : > { %1802 = vmatprep.subr.bf16.mxu1 %v2485_v12 }
 0x205   : > { %1803 = vmatpush1.bf16.msra.mxu1 %v2402_v48 }
 0x206   : > { %1804 = vmatprep.subr.bf16.mxu1 %v2485_v12 }
 0x208   : > { %1772 = vmatmul.mubr.bf16.gmra.mrb[20].mxu1 %v1471_v31 }
 0x209   : > { %1805 = vmatpush1.bf16.msra.mxu1 %v2403_v25  ;;  %2151 = vmatprep.mubr.msk.bf16.mxu1 %vm1287_vm1, %v1474_v42 }
 0x20a   : > { %1806 = vmatprep.subr.bf16.mxu1 %v2485_v12 }
 0x20d   : > { %1807 = vmatpush1.bf16.msra.mxu1 %v2404_v13 }
 0x20e   : > { %1808 = vmatprep.subr.bf16.mxu1 %v2485_v12 }
 0x210   : > { %1782 = vmatmul.mubr.bf16.gmra.mrb[24].mxu1 %v1473_v41 }
 0x211   : > { %1809 = vmatpush1.bf16.msra.mxu1 %v2405_v51  ;;  %2152 = vmatprep.mubr.msk.bf16.mxu1 %vm1287_vm1, %v1476_v45 }
 0x212   : > { %1810 = vmatprep.subr.bf16.mxu1 %v2485_v12 }
 0x215   : > { %1811 = vmatpush1.bf16.msra.mxu1 %v2406_v52 }
 0x216   : > { %1812 = vmatprep.subr.bf16.mxu1 %v2485_v12 }
 0x218   : > { %1792 = vmatmul.mubr.bf16.gmra.mrb[28].mxu1 %v1475_v55 }
 0x219   : > { %1813 = vmatpush1.bf16.msra.mxu1 %v2407_v54  ;;  %2153 = vmatprep.mubr.msk.bf16.mxu1 %vm1287_vm1, %v1470_v26 }
 0x21a   : > { %1814 = vmatprep.subr.bf16.mxu1 %v2485_v12 }
 0x21d   : > { %1815 = vmatpush1.bf16.msra.mxu1 %v2408_v57 }
 0x21e   : > { %1816 = vmatprep.subr.bf16.mxu1 %v2485_v12 }
 0x221   : > { %1817 = vmatpush1.bf16.msra.mxu1 %v2409_v58 }
 0x222   : > { %1818 = vmatprep.subr.bf16.mxu1 %v2485_v12 }
 0x225   : > { %1819 = vmatpush1.bf16.msra.mxu1 %v2410_v59 }
 0x226   : > { %1820 = vmatprep.subr.bf16.mxu1 %v2485_v12 }
 0x229   : > { %1821 = vmatpush1.bf16.msra.mxu1 %v2411_v60 }
 0x22a   : > { %1822 = vmatprep.subr.bf16.mxu1 %v2485_v12 }
 0x22d   : > { %1823 = vmatpush1.bf16.msra.mxu1 %v2412_v62 }
 0x230   : > { %1833 = vmatmul.mubr.bf16.vlgmr.msra.gmra.mrb[32].mxu1 %v3276_v23 }
 0x231   : > { %2154 = vmatprep.mubr.msk.bf16.mxu1 %vm1287_vm1, %v3279_v15 }
 0x238   : > { %1841 = vmatmul.mubr.bf16.gmra.mrb[36].mxu1 %v1471_v31 }
 0x239   : > { %2155 = vmatprep.mubr.msk.bf16.mxu1 %vm1287_vm1, %v1474_v42 }
 0x240   : > { %1849 = vmatmul.mubr.bf16.gmra.mrb[40].mxu1 %v1473_v41 }
 0x241   : > { %2156 = vmatprep.mubr.msk.bf16.mxu1 %vm1287_vm1, %v1476_v45 }
 0x248   : > { %1857 = vmatmul.mubr.bf16.gmra.mrb[44].mxu1 %v1475_v55 }
 0x2d3   : > { %v1763_v63 = vpop.f32.mrb[16].mxu1 }
 0x2d4   : > { %1864 = vst [vmem:[%s3328_s11] sm:$0xff] %v1763_v63  ;;  %v1765_v12 = vpop.f32.mrb[17].mxu1 }
 0x2d5   : > { %1865 = vst [vmem:[%s3328_s11 + $0x8] sm:$0xff] %v1765_v12  ;;  %v1767_v2 = vpop.f32.mrb[18].mxu1 }
 0x2d6   : > { %1867 = vst [vmem:[%s3328_s11 + $0x18] sm:$0xff] %v1767_v2  ;;  %v1769_v3 = vpop.f32.mrb[19].mxu1 }
 0x2d7   : > { %1868 = vst [vmem:[%s3328_s11 + $0x20] sm:$0xff] %v1769_v3 }
 0x2db   : > { %v1773_v4 = vpop.f32.mrb[20].mxu1 }
 0x2dc   : > { %1870 = vst [vmem:[%s3328_s11 + $0x30] sm:$0xff] %v1773_v4  ;;  %v1775_v5 = vpop.f32.mrb[21].mxu1 }
 0x2dd   : > { %1871 = vst [vmem:[%s3328_s11 + $0x38] sm:$0xff] %v1775_v5  ;;  %v1777_v0 = vpop.f32.mrb[22].mxu1 }
 0x2de   : > { %1873 = vst [vmem:[%s3328_s11 + $0x48] sm:$0xff] %v1777_v0  ;;  %v1779_v6 = vpop.f32.mrb[23].mxu1 }
 0x2df   : > { %1874 = vst [vmem:[%s3328_s11 + $0x50] sm:$0xff] %v1779_v6 }
 0x2e3   : > { %v1783_v30 = vpop.f32.mrb[24].mxu1 }
 0x2e4   : > { %1876 = vst [vmem:[%s3328_s11 + $0x60] sm:$0xff] %v1783_v30  ;;  %v1785_v19 = vpop.f32.mrb[25].mxu1 }
 0x2e5   : > { %1877 = vst [vmem:[%s3328_s11 + $0x68] sm:$0xff] %v1785_v19  ;;  %v1787_v7 = vpop.f32.mrb[26].mxu1 }
 0x2e6   : > { %1879 = vst [vmem:[%s3328_s11 + $0x78] sm:$0xff] %v1787_v7  ;;  %v1789_v8 = vpop.f32.mrb[27].mxu1 }
 0x2e7   : > { %1880 = vst [vmem:[%s3328_s11 + $0x80] sm:$0xff] %v1789_v8 }
 0x2eb   : > { %v1793_v33 = vpop.f32.mrb[28].mxu1 }
 0x2ec   : > { %1882 = vst [vmem:[%s3328_s11 + $0x90] sm:$0x1] %v1793_v33  ;;  %v1795_v9 = vpop.f32.mrb[29].mxu1 }
 0x2ed   : > { %1883 = vst [vmem:[%s3328_s11 + $0x98] sm:$0x1] %v1795_v9  ;;  %v1797_v1 = vpop.f32.mrb[30].mxu1 }
 0x2ee   : > { %v1798_v10 = vpop.f32.mrb[31].mxu1 }
 0x303   : > { %v1834_v11 = vpop.f32.mrb[32].mxu1 }
 0x304   : > { %1866 = vst [vmem:[%s3328_s11 + $0x10] sm:$0xff] %v1834_v11  ;;  %v1836_v14 = vpop.f32.mrb[33].mxu1 }
 0x305   : > { %v1837_v18 = vpop.f32.mrb[34].mxu1 }
 0x306   : > { %1869 = vst [vmem:[%s3328_s11 + $0x28] sm:$0xff] %v1837_v18  ;;  %v1839_v21 = vpop.f32.mrb[35].mxu1 }
 0x30b   : > { %v1842_v16 = vpop.f32.mrb[36].mxu1 }
 0x30c   : > { %1872 = vst [vmem:[%s3328_s11 + $0x40] sm:$0xff] %v1842_v16  ;;  %v1844_v24 = vpop.f32.mrb[37].mxu1 }
 0x30d   : > { %v1845_v27 = vpop.f32.mrb[38].mxu1 }
 0x30e   : > { %1875 = vst [vmem:[%s3328_s11 + $0x58] sm:$0xff] %v1845_v27  ;;  %v1847_v29 = vpop.f32.mrb[39].mxu1 }
 0x313   : > { %v1850_v17 = vpop.f32.mrb[40].mxu1 }
 0x314   : > { %1878 = vst [vmem:[%s3328_s11 + $0x70] sm:$0xff] %v1850_v17  ;;  %v1852_v32 = vpop.f32.mrb[41].mxu1 }
 0x315   : > { %v1853_v38 = vpop.f32.mrb[42].mxu1 }
 0x316   : > { %1881 = vst [vmem:[%s3328_s11 + $0x88] sm:$0xff] %v1853_v38  ;;  %v1855_v34 = vpop.f32.mrb[43].mxu1 }
 0x31b   : > { %v1858_v26 = vpop.f32.mrb[44].mxu1 }
 0x31c   : > { %1884 = vst [vmem:[%s3328_s11 + $0xa0] sm:$0x1] %v1858_v26  ;;  %v1860_v35 = vpop.f32.mrb[45].mxu1 }
 0x31d   : > { %v1861_v23 = vpop.f32.mrb[46].mxu1 }
 0x31e   : > { %2434 = shalt.err (!%p2431_p5)
}
 0x31f   : > { %s2435_s28 = scalar_lea.hbm %s3356_s16, 2688  ;;  %s2439_s10 = scalar_lea.hbm %s3408_s6, 8064 }
 0x320   : > { %p2436_p7 = scmp.ne.s32.totalorder %s3356_s16, %s2435_s28  ;;  %p2440_p11 = scmp.lt.u32.totalorder %s3356_s16, %s3408_s6 }
 0x321   : > { %p2441_p12 = scmp.lt.u32.totalorder %s2439_s10, %s2435_s28  ;;  %p2443_p0 = scmp.lt.u32.totalorder %s2435_s28, %s3356_s16 }
 0x322   : > { %p2437_p9 = pnand %p2436_p7, %p2564_p6 }
 0x323   : > { %p2442_p13 = por %p2441_p12, %p2440_p11 }
 0x324   : > { %p2438_p10 = pneg %p2437_p9 }
 0x325   : > { %p2444_p1 = por %p2443_p0, %p2442_p13 }
 0x327   : > { %p2445_p2 = pnand %p2444_p1, %p2438_p10 }
 0x329   : > { %2448 = shalt.err (!%p2445_p2)
}
 0x32a   : > { %s2488_s14 = smov 384   ;;  %s2489_s15 = smov 1152   ;;  %v1862_v15 = vpop.f32.mrb[47].mxu1 }
 0x32b   : > { %s2490_s19 = smov 24  }
 0x32c   : > { %2195 = dma.vmem_to_hbm [thread:$0]  (%p2564_p6), %s3358_s13, 2688, %s3356_s16, %s1886_s17, %s2488_s14, %s2489_s15, %s2490_s19  }
 0x32d PF: > { %p2201_p3 = scmp.ge.s32.totalorder %s2483_s24, 2  ;;  %s1914_s25 = sand.u32 1, %s2471_s21  }
 0x32e   : > { %s1915_s20 = scalar_lea.sflag [#allocation4], %s1914_s25 }
 0x32f   : > { %p2198_p4 = pnand %p2201_p3, %p2568_p8 }
 0x331   : > { %2466 = dma.done.wait (!%p2198_p4), %s1915_s20, 2688  }
 0x332   : > { %2468 = vsyncadd (!%p2198_p4), %s1915_s20, 4294964608  ;;  %p16_p5 = scmp.ge.s32.totalorder %s2549_s27, 5   ;;  %s3411_s21 = smov %s2475_s22 }
 0x333   : > { %s3412_s22 = smov %s2479_s23  ;;  %s3413_s23 = smov %s2562_s30 }
 0x334   : > { %s3414_s24 = smov %s2549_s27  ;;  %18 = sbr.rel (!%p16_p5) target bundleno = 3 (0x3), region = 116 }
 0x33b   :  { %1920 = vsyncpa [#allocation4], 1 }
 0x33c   :  { %1922 = vsyncpa [#allocation4 + $0x1], 1 }

</bundles_post_ra>
